<compile_context>
chip_gen: v5e
topology: v5e:2x2
jax: 0.10.0
libtpu: 0.0.40
codegen_flags: <defaults>
</compile_context>

<pallas_src>
import functools

import jax
import jax.numpy as jnp
from jax import lax
from jax.experimental import pallas as pl
from jax.experimental.pallas import tpu as pltpu


def _roll_to(a, d, axis):
    """out[..., i, ...] = a[..., (i + d) mod n, ...] along `axis` (static int d)."""
    n = a.shape[axis]
    if d % n == 0:
        return a
    return pltpu.roll(a, shift=(-d) % n, axis=axis)


def _valid_mask(row, col, d, axis, valid_h, valid_w):
    """True where the shifted source index (i + d) lies inside the valid image."""
    idx = row if axis == 0 else col
    lim = valid_h if axis == 0 else valid_w
    return (idx + d >= 0) & (idx + d < lim)


def _shift_zero(a, d, axis, row, col, valid_h, valid_w):
    """out[i] = a[i + d] along `axis`, 0 where i + d is outside the valid image.

    Reproduces PyTorch ZeroPad2d + shifted-window slicing with an XLU roll plus a
    VPU select (no concatenate copies, no zero buffers)."""
    if d == 0:
        return a
    rolled = _roll_to(a, d, axis)
    m = _valid_mask(row, col, d, axis, valid_h, valid_w)
    return jnp.where(m, rolled, 0.0)


def _sobel(x, row, col, valid_h, valid_w):
    """F.conv2d(x, sobel_kernel_pair, padding=1), separable form (6 shifts)."""
    sh = functools.partial(_shift_zero, row=row, col=col,
                           valid_h=valid_h, valid_w=valid_w)
    up = sh(x, -1, 0)                       # x[i-1, j]
    dn = sh(x, 1, 0)                        # x[i+1, j]
    dv = dn - up
    s0 = sh(dv, -1, 1) + 2.0 * dv + sh(dv, 1, 1)          # [[-1,-2,-1],[0,0,0],[1,2,1]]
    rs = up + 2.0 * x + dn
    s1 = sh(rs, 1, 1) - sh(rs, -1, 1)                      # transposed kernel
    return s0, s1


def _sobel_max_kernel(x_ref, max_ref, *, valid_h, valid_w):
    """Phase 1: per-image max of the Sobel magnitude (pad region excluded)."""
    x = x_ref[0]
    hp, wp = x.shape
    row = lax.broadcasted_iota(jnp.int32, (hp, wp), 0)
    col = lax.broadcasted_iota(jnp.int32, (hp, wp), 1)
    s0, s1 = _sobel(x, row, col, valid_h, valid_w)
    mag = jnp.sqrt(s0 * s0 + s1 * s1)
    mag = jnp.where((row < valid_h) & (col < valid_w), mag, 0.0)
    max_ref[0, :, :] = jnp.max(mag, axis=(0, 1), keepdims=True)


def _etf_kernel(inv_ref, x_ref, out_ref, *, mu, iterations, valid_h, valid_w):
    """Phase 2: Sobel + tangent init + iterations*2 directional ETF smoothing passes."""
    x = x_ref[0]
    hp, wp = x.shape
    row = lax.broadcasted_iota(jnp.int32, (hp, wp), 0)
    col = lax.broadcasted_iota(jnp.int32, (hp, wp), 1)

    # --- Sobel + magnitude normalized by the global (batch) max: scalar from SMEM ---
    s0, s1 = _sobel(x, row, col, valid_h, valid_w)
    sq = s0 * s0 + s1 * s1
    smag = jnp.sqrt(sq) * inv_ref[0, 0]

    # --- tangent init: (-sobel1, sobel0), normalized with rsqrt * mul ---
    inv_t = jnp.where(sq == 0.0, 1.0, lax.rsqrt(sq))
    t0 = -s1 * inv_t
    t1 = s0 * inv_t

    # --- hoisted tanh weight maps: depend only on smag, reused by every iteration.
    # Boundary mask folded in -> out-of-image neighbours contribute exactly 0,
    # matching the reference's ZeroPad2d zeros (and neutralizing roll wrap-around).
    wmaps = {}
    for axis in (0, 1):
        for d in range(-mu, mu + 1):
            if d == 0:
                continue
            m = _valid_mask(row, col, d, axis, valid_h, valid_w)
            sY = _roll_to(smag, d, axis)
            wmaps[(axis, d)] = jnp.where(m, 0.5 * (jnp.tanh(sY - smag) + 1.0), 0.0)

    # --- ETF smoothing: iterations x (Vertical/H pass, Horizontal/W pass) ---
    # mu=2, iterations=3 -> 24 unrolled bodies is fine; use lax.fori_loop for big configs.
    for _ in range(iterations):
        for axis in (0, 1):
            tX0, tX1 = t0, t1
            w0 = 0.5 * (tX0 * tX0 + tX1 * tX1)   # d == 0 term (tanh(0) + 1 == 1)
            n0 = tX0 * w0
            n1 = tX1 * w0
            for d in range(-mu, mu + 1):
                if d == 0:
                    continue
                tY0 = _roll_to(tX0, d, axis)
                tY1 = _roll_to(tX1, d, axis)
                w = wmaps[(axis, d)] * (tX0 * tY0 + tX1 * tY1)
                n0 = n0 + tY0 * w
                n1 = n1 + tY1 * w
            nsq = n0 * n0 + n1 * n1
            inv_n = jnp.where(nsq == 0.0, 1.0, lax.rsqrt(nsq))
            t0 = n0 * inv_n
            t1 = n1 * inv_n

    out_ref[0, 0, :, :] = t0
    out_ref[0, 1, :, :] = t1


def _round_up(v, m):
    return ((v + m - 1) // m) * m


@functools.partial(jax.jit, static_argnames=("mu", "iterations"))
def etf_forward(x, *, mu=2, iterations=3):
    """JAX/Pallas equivalent of ETF(mu, iterations)(x).  x: (N, 1, H, W) float."""
    N, C, H, W = x.shape
    assert C == 1, "Sobel in the reference module expects a single input channel"
    xs = x[:, 0, :, :].astype(jnp.float32)

    # lane-dense layout: pad W to a multiple of 128 (lanes), H to a multiple of 8
    # (sublanes).  Masks in-kernel use the original H/W so results in the valid
    # region are identical to the unpadded computation.
    Hp = max(8, _round_up(H, 8))
    Wp = max(128, _round_up(W, 128))
    if (Hp, Wp) != (H, W):
        xs = jnp.pad(xs, ((0, 0), (0, Hp - H), (0, Wp - W)))

    cparams = pltpu.CompilerParams(dimension_semantics=("parallel",))

    # phase 1: per-image Sobel-magnitude max; global max (over the whole batch, as in
    # the reference) and its reciprocal are reduced to a scalar in the wrapper.
    per_image_max = pl.pallas_call(
        functools.partial(_sobel_max_kernel, valid_h=H, valid_w=W),
        grid=(N,),
        in_specs=[pl.BlockSpec((1, Hp, Wp), lambda n: (n, 0, 0))],
        out_specs=pl.BlockSpec((1, 1, 1), lambda n: (n, 0, 0)),
        out_shape=jax.ShapeDtypeStruct((N, 1, 1), jnp.float32),
        compiler_params=cparams,
    )(xs)
    inv_max = (1.0 / jnp.max(per_image_max)).reshape(1, 1).astype(jnp.float32)

    # phase 2: full ETF, one image per grid step, NCHW output written directly.
    out = pl.pallas_call(
        functools.partial(_etf_kernel, mu=mu, iterations=iterations,
                          valid_h=H, valid_w=W),
        grid=(N,),
        in_specs=[pl.BlockSpec(memory_space=pltpu.MemorySpace.SMEM),
                  pl.BlockSpec((1, Hp, Wp), lambda n: (n, 0, 0))],
        out_specs=pl.BlockSpec((1, 2, Hp, Wp), lambda n: (n, 0, 0, 0)),
        out_shape=jax.ShapeDtypeStruct((N, 2, Hp, Wp), jnp.float32),
        compiler_params=cparams,
    )(inv_max, xs)

    if (Hp, Wp) != (H, W):
        out = out[:, :, :H, :W]
    return out


# TODO(synk): `show_progress` / `_show_arrows` is matplotlib visualization only; it has
# no kernel equivalent and is intentionally omitted.

if __name__ == "__main__":
    key = jax.random.PRNGKey(0)
    x = jax.random.uniform(key, (2, 1, 16, 16), dtype=jnp.float32)

    out = etf_forward(x, mu=2, iterations=3)
    out = jax.block_until_ready(out)

    assert out.shape == (2, 2, 16, 16), out.shape
    assert bool(jnp.all(jnp.isfinite(out)))
    print("KERNEL_OK")
</pallas_src>

<mosaic_0001>
module attributes {stable_mosaic.version = 11 : i64} {
  func.func @_sobel_max_kernel(%arg0: i32, %arg1: memref<1x16x128xf32, #tpu.memory_space<vmem>>, %arg2: memref<1x1x1xf32, #tpu.memory_space<vmem>>) attributes {dimension_semantics = [#tpu.dimension_semantics<parallel>], iteration_bounds = array<i64: 2>, scalar_prefetch = 0 : i64, scratch_operands = 0 : i64, tpu.core_type = #tpu.core_type<tc>, window_params = [{transform_indices = @transform_0, window_bounds = array<i64: 1, 16, 128>}, {transform_indices = @transform_1, window_bounds = array<i64: 1, 1, 1>}]} {
    %c0 = arith.constant 0 : index
    %c0_0 = arith.constant 0 : index
    %c0_1 = arith.constant 0 : index
    %0 = vector.load %arg1[%c0, %c0_0, %c0_1] : memref<1x16x128xf32, #tpu.memory_space<vmem>>, vector<1x16x128xf32>
    %1 = vector.shape_cast %0 : vector<1x16x128xf32> to vector<16x128xf32>
    %2 = tpu.iota {dimensions = array<i32: 0>} : vector<16x128xi32>
    %3 = tpu.iota {dimensions = array<i32: 1>} : vector<16x128xi32>
    %c1_i32 = arith.constant 1 : i32
    %4 = tpu.dynamic_rotate %1 by %c1_i32 dim 0 : vector<16x128xf32>, i32 -> vector<16x128xf32>
    %c-1_i32 = arith.constant -1 : i32
    %5 = vector.broadcast %c-1_i32 : i32 to vector<16x128xi32>
    %6 = arith.addi %2, %5 : vector<16x128xi32>
    %c0_i32 = arith.constant 0 : i32
    %7 = vector.broadcast %c0_i32 : i32 to vector<16x128xi32>
    %8 = arith.cmpi sge, %6, %7 : vector<16x128xi32>
    %c-1_i32_2 = arith.constant -1 : i32
    %9 = vector.broadcast %c-1_i32_2 : i32 to vector<16x128xi32>
    %10 = arith.addi %2, %9 : vector<16x128xi32>
    %c16_i32 = arith.constant 16 : i32
    %11 = vector.broadcast %c16_i32 : i32 to vector<16x128xi32>
    %12 = arith.cmpi slt, %10, %11 : vector<16x128xi32>
    %13 = arith.andi %8, %12 : vector<16x128xi1>
    %cst = arith.constant 0.000000e+00 : f32
    %14 = vector.broadcast %cst : f32 to vector<16x128xf32>
    %15 = arith.select %13, %4, %14 : vector<16x128xi1>, vector<16x128xf32>
    %c15_i32 = arith.constant 15 : i32
    %16 = tpu.dynamic_rotate %1 by %c15_i32 dim 0 : vector<16x128xf32>, i32 -> vector<16x128xf32>
    %c1_i32_3 = arith.constant 1 : i32
    %17 = vector.broadcast %c1_i32_3 : i32 to vector<16x128xi32>
    %18 = arith.addi %2, %17 : vector<16x128xi32>
    %c0_i32_4 = arith.constant 0 : i32
    %19 = vector.broadcast %c0_i32_4 : i32 to vector<16x128xi32>
    %20 = arith.cmpi sge, %18, %19 : vector<16x128xi32>
    %c1_i32_5 = arith.constant 1 : i32
    %21 = vector.broadcast %c1_i32_5 : i32 to vector<16x128xi32>
    %22 = arith.addi %2, %21 : vector<16x128xi32>
    %c16_i32_6 = arith.constant 16 : i32
    %23 = vector.broadcast %c16_i32_6 : i32 to vector<16x128xi32>
    %24 = arith.cmpi slt, %22, %23 : vector<16x128xi32>
    %25 = arith.andi %20, %24 : vector<16x128xi1>
    %cst_7 = arith.constant 0.000000e+00 : f32
    %26 = vector.broadcast %cst_7 : f32 to vector<16x128xf32>
    %27 = arith.select %25, %16, %26 : vector<16x128xi1>, vector<16x128xf32>
    %28 = arith.subf %27, %15 : vector<16x128xf32>
    %c1_i32_8 = arith.constant 1 : i32
    %29 = tpu.dynamic_rotate %28 by %c1_i32_8 dim 1 : vector<16x128xf32>, i32 -> vector<16x128xf32>
    %c-1_i32_9 = arith.constant -1 : i32
    %30 = vector.broadcast %c-1_i32_9 : i32 to vector<16x128xi32>
    %31 = arith.addi %3, %30 : vector<16x128xi32>
    %c0_i32_10 = arith.constant 0 : i32
    %32 = vector.broadcast %c0_i32_10 : i32 to vector<16x128xi32>
    %33 = arith.cmpi sge, %31, %32 : vector<16x128xi32>
    %c-1_i32_11 = arith.constant -1 : i32
    %34 = vector.broadcast %c-1_i32_11 : i32 to vector<16x128xi32>
    %35 = arith.addi %3, %34 : vector<16x128xi32>
    %c16_i32_12 = arith.constant 16 : i32
    %36 = vector.broadcast %c16_i32_12 : i32 to vector<16x128xi32>
    %37 = arith.cmpi slt, %35, %36 : vector<16x128xi32>
    %38 = arith.andi %33, %37 : vector<16x128xi1>
    %cst_13 = arith.constant 0.000000e+00 : f32
    %39 = vector.broadcast %cst_13 : f32 to vector<16x128xf32>
    %40 = arith.select %38, %29, %39 : vector<16x128xi1>, vector<16x128xf32>
    %cst_14 = arith.constant 2.000000e+00 : f32
    %41 = vector.broadcast %cst_14 : f32 to vector<16x128xf32>
    %42 = arith.mulf %41, %28 : vector<16x128xf32>
    %43 = arith.addf %40, %42 : vector<16x128xf32>
    %c127_i32 = arith.constant 127 : i32
    %44 = tpu.dynamic_rotate %28 by %c127_i32 dim 1 : vector<16x128xf32>, i32 -> vector<16x128xf32>
    %c1_i32_15 = arith.constant 1 : i32
    %45 = vector.broadcast %c1_i32_15 : i32 to vector<16x128xi32>
    %46 = arith.addi %3, %45 : vector<16x128xi32>
    %c0_i32_16 = arith.constant 0 : i32
    %47 = vector.broadcast %c0_i32_16 : i32 to vector<16x128xi32>
    %48 = arith.cmpi sge, %46, %47 : vector<16x128xi32>
    %c1_i32_17 = arith.constant 1 : i32
    %49 = vector.broadcast %c1_i32_17 : i32 to vector<16x128xi32>
    %50 = arith.addi %3, %49 : vector<16x128xi32>
    %c16_i32_18 = arith.constant 16 : i32
    %51 = vector.broadcast %c16_i32_18 : i32 to vector<16x128xi32>
    %52 = arith.cmpi slt, %50, %51 : vector<16x128xi32>
    %53 = arith.andi %48, %52 : vector<16x128xi1>
    %cst_19 = arith.constant 0.000000e+00 : f32
    %54 = vector.broadcast %cst_19 : f32 to vector<16x128xf32>
    %55 = arith.select %53, %44, %54 : vector<16x128xi1>, vector<16x128xf32>
    %56 = arith.addf %43, %55 : vector<16x128xf32>
    %cst_20 = arith.constant 2.000000e+00 : f32
    %57 = vector.broadcast %cst_20 : f32 to vector<16x128xf32>
    %58 = arith.mulf %57, %1 : vector<16x128xf32>
    %59 = arith.addf %15, %58 : vector<16x128xf32>
    %60 = arith.addf %59, %27 : vector<16x128xf32>
    %c127_i32_21 = arith.constant 127 : i32
    %61 = tpu.dynamic_rotate %60 by %c127_i32_21 dim 1 : vector<16x128xf32>, i32 -> vector<16x128xf32>
    %c1_i32_22 = arith.constant 1 : i32
    %62 = vector.broadcast %c1_i32_22 : i32 to vector<16x128xi32>
    %63 = arith.addi %3, %62 : vector<16x128xi32>
    %c0_i32_23 = arith.constant 0 : i32
    %64 = vector.broadcast %c0_i32_23 : i32 to vector<16x128xi32>
    %65 = arith.cmpi sge, %63, %64 : vector<16x128xi32>
    %c1_i32_24 = arith.constant 1 : i32
    %66 = vector.broadcast %c1_i32_24 : i32 to vector<16x128xi32>
    %67 = arith.addi %3, %66 : vector<16x128xi32>
    %c16_i32_25 = arith.constant 16 : i32
    %68 = vector.broadcast %c16_i32_25 : i32 to vector<16x128xi32>
    %69 = arith.cmpi slt, %67, %68 : vector<16x128xi32>
    %70 = arith.andi %65, %69 : vector<16x128xi1>
    %cst_26 = arith.constant 0.000000e+00 : f32
    %71 = vector.broadcast %cst_26 : f32 to vector<16x128xf32>
    %72 = arith.select %70, %61, %71 : vector<16x128xi1>, vector<16x128xf32>
    %c1_i32_27 = arith.constant 1 : i32
    %73 = tpu.dynamic_rotate %60 by %c1_i32_27 dim 1 : vector<16x128xf32>, i32 -> vector<16x128xf32>
    %c-1_i32_28 = arith.constant -1 : i32
    %74 = vector.broadcast %c-1_i32_28 : i32 to vector<16x128xi32>
    %75 = arith.addi %3, %74 : vector<16x128xi32>
    %c0_i32_29 = arith.constant 0 : i32
    %76 = vector.broadcast %c0_i32_29 : i32 to vector<16x128xi32>
    %77 = arith.cmpi sge, %75, %76 : vector<16x128xi32>
    %c-1_i32_30 = arith.constant -1 : i32
    %78 = vector.broadcast %c-1_i32_30 : i32 to vector<16x128xi32>
    %79 = arith.addi %3, %78 : vector<16x128xi32>
    %c16_i32_31 = arith.constant 16 : i32
    %80 = vector.broadcast %c16_i32_31 : i32 to vector<16x128xi32>
    %81 = arith.cmpi slt, %79, %80 : vector<16x128xi32>
    %82 = arith.andi %77, %81 : vector<16x128xi1>
    %cst_32 = arith.constant 0.000000e+00 : f32
    %83 = vector.broadcast %cst_32 : f32 to vector<16x128xf32>
    %84 = arith.select %82, %73, %83 : vector<16x128xi1>, vector<16x128xf32>
    %85 = arith.subf %72, %84 : vector<16x128xf32>
    %86 = arith.mulf %56, %56 : vector<16x128xf32>
    %87 = arith.mulf %85, %85 : vector<16x128xf32>
    %88 = arith.addf %86, %87 : vector<16x128xf32>
    %89 = math.sqrt %88 : vector<16x128xf32>
    %c16_i32_33 = arith.constant 16 : i32
    %90 = vector.broadcast %c16_i32_33 : i32 to vector<16x128xi32>
    %91 = arith.cmpi slt, %2, %90 : vector<16x128xi32>
    %c16_i32_34 = arith.constant 16 : i32
    %92 = vector.broadcast %c16_i32_34 : i32 to vector<16x128xi32>
    %93 = arith.cmpi slt, %3, %92 : vector<16x128xi32>
    %94 = arith.andi %91, %93 : vector<16x128xi1>
    %cst_35 = arith.constant 0.000000e+00 : f32
    %95 = vector.broadcast %cst_35 : f32 to vector<16x128xf32>
    %96 = arith.select %94, %89, %95 : vector<16x128xi1>, vector<16x128xf32>
    %97 = vector.shape_cast %96 : vector<16x128xf32> to vector<1x16x128xf32>
    %cst_36 = arith.constant dense<0xFF800000> : vector<1xf32>
    %98 = vector.multi_reduction <maximumf>, %97, %cst_36 [1, 2] : vector<1x16x128xf32> to vector<1xf32>
    %99 = vector.shape_cast %98 : vector<1xf32> to vector<1x1x1xf32>
    %100 = vector.extract %99[0, 0, 0] : f32 from vector<1x1x1xf32>
    %101 = vector.broadcast %100 : f32 to vector<1x1xf32>
    %c0_37 = arith.constant 0 : index
    %c0_38 = arith.constant 0 : index
    %c0_39 = arith.constant 0 : index
    %102 = vector.load %arg2[%c0_37, %c0_38, %c0_39] : memref<1x1x1xf32, #tpu.memory_space<vmem>>, vector<1x1x1xf32>
    %103 = vector.shape_cast %102 : vector<1x1x1xf32> to vector<1x1xf32>
    %104 = vector.shape_cast %101 : vector<1x1xf32> to vector<1x1x1xf32>
    tpu.vector_store %arg2[%c0_37, %c0_38, %c0_39], %104 {strides = array<i32>} : memref<1x1x1xf32, #tpu.memory_space<vmem>>, vector<1x1x1xf32>,
    return
  }
  func.func @transform_0(%arg0: i32) -> (i32, i32, i32) {
    %c0_i32 = arith.constant 0 : i32
    %c0_i32_0 = arith.constant 0 : i32
    %c0_i32_1 = arith.constant 0 : i32
    return %arg0, %c0_i32, %c0_i32_0 : i32, i32, i32
  }
  func.func @transform_1(%arg0: i32) -> (i32, i32, i32) {
    %c0_i32 = arith.constant 0 : i32
    %c0_i32_0 = arith.constant 0 : i32
    %c0_i32_1 = arith.constant 0 : i32
    return %arg0, %c0_i32, %c0_i32_0 : i32, i32, i32
  }
}

module attributes {stable_mosaic.version = 11 : i64} {
  func.func @_etf_kernel(%arg0: i32, %arg1: memref<1x1xf32, #tpu.memory_space<smem>>, %arg2: memref<1x16x128xf32, #tpu.memory_space<vmem>>, %arg3: memref<1x2x16x128xf32, #tpu.memory_space<vmem>>) attributes {dimension_semantics = [#tpu.dimension_semantics<parallel>], iteration_bounds = array<i64: 2>, scalar_prefetch = 0 : i64, scratch_operands = 0 : i64, tpu.core_type = #tpu.core_type<tc>, window_params = [{transform_indices = @transform_0, window_bounds = array<i64: 1, 1>}, {transform_indices = @transform_1, window_bounds = array<i64: 1, 16, 128>}, {transform_indices = @transform_2, window_bounds = array<i64: 1, 2, 16, 128>}]} {
    %c0 = arith.constant 0 : index
    %c0_0 = arith.constant 0 : index
    %c0_1 = arith.constant 0 : index
    %0 = vector.load %arg2[%c0, %c0_0, %c0_1] : memref<1x16x128xf32, #tpu.memory_space<vmem>>, vector<1x16x128xf32>
    %1 = vector.shape_cast %0 : vector<1x16x128xf32> to vector<16x128xf32>
    %2 = tpu.iota {dimensions = array<i32: 0>} : vector<16x128xi32>
    %3 = tpu.iota {dimensions = array<i32: 1>} : vector<16x128xi32>
    %c1_i32 = arith.constant 1 : i32
    %4 = tpu.dynamic_rotate %1 by %c1_i32 dim 0 : vector<16x128xf32>, i32 -> vector<16x128xf32>
    %c-1_i32 = arith.constant -1 : i32
    %5 = vector.broadcast %c-1_i32 : i32 to vector<16x128xi32>
    %6 = arith.addi %2, %5 : vector<16x128xi32>
    %c0_i32 = arith.constant 0 : i32
    %7 = vector.broadcast %c0_i32 : i32 to vector<16x128xi32>
    %8 = arith.cmpi sge, %6, %7 : vector<16x128xi32>
    %c-1_i32_2 = arith.constant -1 : i32
    %9 = vector.broadcast %c-1_i32_2 : i32 to vector<16x128xi32>
    %10 = arith.addi %2, %9 : vector<16x128xi32>
    %c16_i32 = arith.constant 16 : i32
    %11 = vector.broadcast %c16_i32 : i32 to vector<16x128xi32>
    %12 = arith.cmpi slt, %10, %11 : vector<16x128xi32>
    %13 = arith.andi %8, %12 : vector<16x128xi1>
    %cst = arith.constant 0.000000e+00 : f32
    %14 = vector.broadcast %cst : f32 to vector<16x128xf32>
    %15 = arith.select %13, %4, %14 : vector<16x128xi1>, vector<16x128xf32>
    %c15_i32 = arith.constant 15 : i32
    %16 = tpu.dynamic_rotate %1 by %c15_i32 dim 0 : vector<16x128xf32>, i32 -> vector<16x128xf32>
    %c1_i32_3 = arith.constant 1 : i32
    %17 = vector.broadcast %c1_i32_3 : i32 to vector<16x128xi32>
    %18 = arith.addi %2, %17 : vector<16x128xi32>
    %c0_i32_4 = arith.constant 0 : i32
    %19 = vector.broadcast %c0_i32_4 : i32 to vector<16x128xi32>
    %20 = arith.cmpi sge, %18, %19 : vector<16x128xi32>
    %c1_i32_5 = arith.constant 1 : i32
    %21 = vector.broadcast %c1_i32_5 : i32 to vector<16x128xi32>
    %22 = arith.addi %2, %21 : vector<16x128xi32>
    %c16_i32_6 = arith.constant 16 : i32
    %23 = vector.broadcast %c16_i32_6 : i32 to vector<16x128xi32>
    %24 = arith.cmpi slt, %22, %23 : vector<16x128xi32>
    %25 = arith.andi %20, %24 : vector<16x128xi1>
    %cst_7 = arith.constant 0.000000e+00 : f32
    %26 = vector.broadcast %cst_7 : f32 to vector<16x128xf32>
    %27 = arith.select %25, %16, %26 : vector<16x128xi1>, vector<16x128xf32>
    %28 = arith.subf %27, %15 : vector<16x128xf32>
    %c1_i32_8 = arith.constant 1 : i32
    %29 = tpu.dynamic_rotate %28 by %c1_i32_8 dim 1 : vector<16x128xf32>, i32 -> vector<16x128xf32>
    %c-1_i32_9 = arith.constant -1 : i32
    %30 = vector.broadcast %c-1_i32_9 : i32 to vector<16x128xi32>
    %31 = arith.addi %3, %30 : vector<16x128xi32>
    %c0_i32_10 = arith.constant 0 : i32
    %32 = vector.broadcast %c0_i32_10 : i32 to vector<16x128xi32>
    %33 = arith.cmpi sge, %31, %32 : vector<16x128xi32>
    %c-1_i32_11 = arith.constant -1 : i32
    %34 = vector.broadcast %c-1_i32_11 : i32 to vector<16x128xi32>
    %35 = arith.addi %3, %34 : vector<16x128xi32>
    %c16_i32_12 = arith.constant 16 : i32
    %36 = vector.broadcast %c16_i32_12 : i32 to vector<16x128xi32>
    %37 = arith.cmpi slt, %35, %36 : vector<16x128xi32>
    %38 = arith.andi %33, %37 : vector<16x128xi1>
    %cst_13 = arith.constant 0.000000e+00 : f32
    %39 = vector.broadcast %cst_13 : f32 to vector<16x128xf32>
    %40 = arith.select %38, %29, %39 : vector<16x128xi1>, vector<16x128xf32>
    %cst_14 = arith.constant 2.000000e+00 : f32
    %41 = vector.broadcast %cst_14 : f32 to vector<16x128xf32>
    %42 = arith.mulf %41, %28 : vector<16x128xf32>
    %43 = arith.addf %40, %42 : vector<16x128xf32>
    %c127_i32 = arith.constant 127 : i32
    %44 = tpu.dynamic_rotate %28 by %c127_i32 dim 1 : vector<16x128xf32>, i32 -> vector<16x128xf32>
    %c1_i32_15 = arith.constant 1 : i32
    %45 = vector.broadcast %c1_i32_15 : i32 to vector<16x128xi32>
    %46 = arith.addi %3, %45 : vector<16x128xi32>
    %c0_i32_16 = arith.constant 0 : i32
    %47 = vector.broadcast %c0_i32_16 : i32 to vector<16x128xi32>
    %48 = arith.cmpi sge, %46, %47 : vector<16x128xi32>
    %c1_i32_17 = arith.constant 1 : i32
    %49 = vector.broadcast %c1_i32_17 : i32 to vector<16x128xi32>
    %50 = arith.addi %3, %49 : vector<16x128xi32>
    %c16_i32_18 = arith.constant 16 : i32
    %51 = vector.broadcast %c16_i32_18 : i32 to vector<16x128xi32>
    %52 = arith.cmpi slt, %50, %51 : vector<16x128xi32>
    %53 = arith.andi %48, %52 : vector<16x128xi1>
    %cst_19 = arith.constant 0.000000e+00 : f32
    %54 = vector.broadcast %cst_19 : f32 to vector<16x128xf32>
    %55 = arith.select %53, %44, %54 : vector<16x128xi1>, vector<16x128xf32>
    %56 = arith.addf %43, %55 : vector<16x128xf32>
    %cst_20 = arith.constant 2.000000e+00 : f32
    %57 = vector.broadcast %cst_20 : f32 to vector<16x128xf32>
    %58 = arith.mulf %57, %1 : vector<16x128xf32>
    %59 = arith.addf %15, %58 : vector<16x128xf32>
    %60 = arith.addf %59, %27 : vector<16x128xf32>
    %c127_i32_21 = arith.constant 127 : i32
    %61 = tpu.dynamic_rotate %60 by %c127_i32_21 dim 1 : vector<16x128xf32>, i32 -> vector<16x128xf32>
    %c1_i32_22 = arith.constant 1 : i32
    %62 = vector.broadcast %c1_i32_22 : i32 to vector<16x128xi32>
    %63 = arith.addi %3, %62 : vector<16x128xi32>
    %c0_i32_23 = arith.constant 0 : i32
    %64 = vector.broadcast %c0_i32_23 : i32 to vector<16x128xi32>
    %65 = arith.cmpi sge, %63, %64 : vector<16x128xi32>
    %c1_i32_24 = arith.constant 1 : i32
    %66 = vector.broadcast %c1_i32_24 : i32 to vector<16x128xi32>
    %67 = arith.addi %3, %66 : vector<16x128xi32>
    %c16_i32_25 = arith.constant 16 : i32
    %68 = vector.broadcast %c16_i32_25 : i32 to vector<16x128xi32>
    %69 = arith.cmpi slt, %67, %68 : vector<16x128xi32>
    %70 = arith.andi %65, %69 : vector<16x128xi1>
    %cst_26 = arith.constant 0.000000e+00 : f32
    %71 = vector.broadcast %cst_26 : f32 to vector<16x128xf32>
    %72 = arith.select %70, %61, %71 : vector<16x128xi1>, vector<16x128xf32>
    %c1_i32_27 = arith.constant 1 : i32
    %73 = tpu.dynamic_rotate %60 by %c1_i32_27 dim 1 : vector<16x128xf32>, i32 -> vector<16x128xf32>
    %c-1_i32_28 = arith.constant -1 : i32
    %74 = vector.broadcast %c-1_i32_28 : i32 to vector<16x128xi32>
    %75 = arith.addi %3, %74 : vector<16x128xi32>
    %c0_i32_29 = arith.constant 0 : i32
    %76 = vector.broadcast %c0_i32_29 : i32 to vector<16x128xi32>
    %77 = arith.cmpi sge, %75, %76 : vector<16x128xi32>
    %c-1_i32_30 = arith.constant -1 : i32
    %78 = vector.broadcast %c-1_i32_30 : i32 to vector<16x128xi32>
    %79 = arith.addi %3, %78 : vector<16x128xi32>
    %c16_i32_31 = arith.constant 16 : i32
    %80 = vector.broadcast %c16_i32_31 : i32 to vector<16x128xi32>
    %81 = arith.cmpi slt, %79, %80 : vector<16x128xi32>
    %82 = arith.andi %77, %81 : vector<16x128xi1>
    %cst_32 = arith.constant 0.000000e+00 : f32
    %83 = vector.broadcast %cst_32 : f32 to vector<16x128xf32>
    %84 = arith.select %82, %73, %83 : vector<16x128xi1>, vector<16x128xf32>
    %85 = arith.subf %72, %84 : vector<16x128xf32>
    %86 = arith.mulf %56, %56 : vector<16x128xf32>
    %87 = arith.mulf %85, %85 : vector<16x128xf32>
    %88 = arith.addf %86, %87 : vector<16x128xf32>
    %89 = math.sqrt %88 : vector<16x128xf32>
    %c0_33 = arith.constant 0 : index
    %c0_34 = arith.constant 0 : index
    %90 = memref.load %arg1[%c0_33, %c0_34] : memref<1x1xf32, #tpu.memory_space<smem>>
    %91 = vector.broadcast %90 : f32 to vector<16x128xf32>
    %92 = arith.mulf %89, %91 : vector<16x128xf32>
    %cst_35 = arith.constant 0.000000e+00 : f32
    %93 = vector.broadcast %cst_35 : f32 to vector<16x128xf32>
    %94 = arith.cmpf oeq, %88, %93 : vector<16x128xf32>
    %95 = math.rsqrt %88 : vector<16x128xf32>
    %cst_36 = arith.constant 1.000000e+00 : f32
    %96 = vector.broadcast %cst_36 : f32 to vector<16x128xf32>
    %97 = arith.select %94, %96, %95 : vector<16x128xi1>, vector<16x128xf32>
    %cst_37 = arith.constant 0.000000e+00 : f32
    %98 = vector.broadcast %cst_37 : f32 to vector<16x128xf32>
    %99 = arith.subf %98, %85 : vector<16x128xf32>
    %100 = arith.mulf %99, %97 : vector<16x128xf32>
    %101 = arith.mulf %56, %97 : vector<16x128xf32>
    %c-2_i32 = arith.constant -2 : i32
    %102 = vector.broadcast %c-2_i32 : i32 to vector<16x128xi32>
    %103 = arith.addi %2, %102 : vector<16x128xi32>
    %c0_i32_38 = arith.constant 0 : i32
    %104 = vector.broadcast %c0_i32_38 : i32 to vector<16x128xi32>
    %105 = arith.cmpi sge, %103, %104 : vector<16x128xi32>
    %c-2_i32_39 = arith.constant -2 : i32
    %106 = vector.broadcast %c-2_i32_39 : i32 to vector<16x128xi32>
    %107 = arith.addi %2, %106 : vector<16x128xi32>
    %c16_i32_40 = arith.constant 16 : i32
    %108 = vector.broadcast %c16_i32_40 : i32 to vector<16x128xi32>
    %109 = arith.cmpi slt, %107, %108 : vector<16x128xi32>
    %110 = arith.andi %105, %109 : vector<16x128xi1>
    %c2_i32 = arith.constant 2 : i32
    %111 = tpu.dynamic_rotate %92 by %c2_i32 dim 0 : vector<16x128xf32>, i32 -> vector<16x128xf32>
    %112 = arith.subf %111, %92 : vector<16x128xf32>
    %113 = math.tanh %112 : vector<16x128xf32>
    %cst_41 = arith.constant 1.000000e+00 : f32
    %114 = vector.broadcast %cst_41 : f32 to vector<16x128xf32>
    %115 = arith.addf %113, %114 : vector<16x128xf32>
    %cst_42 = arith.constant 5.000000e-01 : f32
    %116 = vector.broadcast %cst_42 : f32 to vector<16x128xf32>
    %117 = arith.mulf %116, %115 : vector<16x128xf32>
    %cst_43 = arith.constant 0.000000e+00 : f32
    %118 = vector.broadcast %cst_43 : f32 to vector<16x128xf32>
    %119 = arith.select %110, %117, %118 : vector<16x128xi1>, vector<16x128xf32>
    %c-1_i32_44 = arith.constant -1 : i32
    %120 = vector.broadcast %c-1_i32_44 : i32 to vector<16x128xi32>
    %121 = arith.addi %2, %120 : vector<16x128xi32>
    %c0_i32_45 = arith.constant 0 : i32
    %122 = vector.broadcast %c0_i32_45 : i32 to vector<16x128xi32>
    %123 = arith.cmpi sge, %121, %122 : vector<16x128xi32>
    %c-1_i32_46 = arith.constant -1 : i32
    %124 = vector.broadcast %c-1_i32_46 : i32 to vector<16x128xi32>
    %125 = arith.addi %2, %124 : vector<16x128xi32>
    %c16_i32_47 = arith.constant 16 : i32
    %126 = vector.broadcast %c16_i32_47 : i32 to vector<16x128xi32>
    %127 = arith.cmpi slt, %125, %126 : vector<16x128xi32>
    %128 = arith.andi %123, %127 : vector<16x128xi1>
    %c1_i32_48 = arith.constant 1 : i32
    %129 = tpu.dynamic_rotate %92 by %c1_i32_48 dim 0 : vector<16x128xf32>, i32 -> vector<16x128xf32>
    %130 = arith.subf %129, %92 : vector<16x128xf32>
    %131 = math.tanh %130 : vector<16x128xf32>
    %cst_49 = arith.constant 1.000000e+00 : f32
    %132 = vector.broadcast %cst_49 : f32 to vector<16x128xf32>
    %133 = arith.addf %131, %132 : vector<16x128xf32>
    %cst_50 = arith.constant 5.000000e-01 : f32
    %134 = vector.broadcast %cst_50 : f32 to vector<16x128xf32>
    %135 = arith.mulf %134, %133 : vector<16x128xf32>
    %cst_51 = arith.constant 0.000000e+00 : f32
    %136 = vector.broadcast %cst_51 : f32 to vector<16x128xf32>
    %137 = arith.select %128, %135, %136 : vector<16x128xi1>, vector<16x128xf32>
    %c1_i32_52 = arith.constant 1 : i32
    %138 = vector.broadcast %c1_i32_52 : i32 to vector<16x128xi32>
    %139 = arith.addi %2, %138 : vector<16x128xi32>
    %c0_i32_53 = arith.constant 0 : i32
    %140 = vector.broadcast %c0_i32_53 : i32 to vector<16x128xi32>
    %141 = arith.cmpi sge, %139, %140 : vector<16x128xi32>
    %c1_i32_54 = arith.constant 1 : i32
    %142 = vector.broadcast %c1_i32_54 : i32 to vector<16x128xi32>
    %143 = arith.addi %2, %142 : vector<16x128xi32>
    %c16_i32_55 = arith.constant 16 : i32
    %144 = vector.broadcast %c16_i32_55 : i32 to vector<16x128xi32>
    %145 = arith.cmpi slt, %143, %144 : vector<16x128xi32>
    %146 = arith.andi %141, %145 : vector<16x128xi1>
    %c15_i32_56 = arith.constant 15 : i32
    %147 = tpu.dynamic_rotate %92 by %c15_i32_56 dim 0 : vector<16x128xf32>, i32 -> vector<16x128xf32>
    %148 = arith.subf %147, %92 : vector<16x128xf32>
    %149 = math.tanh %148 : vector<16x128xf32>
    %cst_57 = arith.constant 1.000000e+00 : f32
    %150 = vector.broadcast %cst_57 : f32 to vector<16x128xf32>
    %151 = arith.addf %149, %150 : vector<16x128xf32>
    %cst_58 = arith.constant 5.000000e-01 : f32
    %152 = vector.broadcast %cst_58 : f32 to vector<16x128xf32>
    %153 = arith.mulf %152, %151 : vector<16x128xf32>
    %cst_59 = arith.constant 0.000000e+00 : f32
    %154 = vector.broadcast %cst_59 : f32 to vector<16x128xf32>
    %155 = arith.select %146, %153, %154 : vector<16x128xi1>, vector<16x128xf32>
    %c2_i32_60 = arith.constant 2 : i32
    %156 = vector.broadcast %c2_i32_60 : i32 to vector<16x128xi32>
    %157 = arith.addi %2, %156 : vector<16x128xi32>
    %c0_i32_61 = arith.constant 0 : i32
    %158 = vector.broadcast %c0_i32_61 : i32 to vector<16x128xi32>
    %159 = arith.cmpi sge, %157, %158 : vector<16x128xi32>
    %c2_i32_62 = arith.constant 2 : i32
    %160 = vector.broadcast %c2_i32_62 : i32 to vector<16x128xi32>
    %161 = arith.addi %2, %160 : vector<16x128xi32>
    %c16_i32_63 = arith.constant 16 : i32
    %162 = vector.broadcast %c16_i32_63 : i32 to vector<16x128xi32>
    %163 = arith.cmpi slt, %161, %162 : vector<16x128xi32>
    %164 = arith.andi %159, %163 : vector<16x128xi1>
    %c14_i32 = arith.constant 14 : i32
    %165 = tpu.dynamic_rotate %92 by %c14_i32 dim 0 : vector<16x128xf32>, i32 -> vector<16x128xf32>
    %166 = arith.subf %165, %92 : vector<16x128xf32>
    %167 = math.tanh %166 : vector<16x128xf32>
    %cst_64 = arith.constant 1.000000e+00 : f32
    %168 = vector.broadcast %cst_64 : f32 to vector<16x128xf32>
    %169 = arith.addf %167, %168 : vector<16x128xf32>
    %cst_65 = arith.constant 5.000000e-01 : f32
    %170 = vector.broadcast %cst_65 : f32 to vector<16x128xf32>
    %171 = arith.mulf %170, %169 : vector<16x128xf32>
    %cst_66 = arith.constant 0.000000e+00 : f32
    %172 = vector.broadcast %cst_66 : f32 to vector<16x128xf32>
    %173 = arith.select %164, %171, %172 : vector<16x128xi1>, vector<16x128xf32>
    %c-2_i32_67 = arith.constant -2 : i32
    %174 = vector.broadcast %c-2_i32_67 : i32 to vector<16x128xi32>
    %175 = arith.addi %3, %174 : vector<16x128xi32>
    %c0_i32_68 = arith.constant 0 : i32
    %176 = vector.broadcast %c0_i32_68 : i32 to vector<16x128xi32>
    %177 = arith.cmpi sge, %175, %176 : vector<16x128xi32>
    %c-2_i32_69 = arith.constant -2 : i32
    %178 = vector.broadcast %c-2_i32_69 : i32 to vector<16x128xi32>
    %179 = arith.addi %3, %178 : vector<16x128xi32>
    %c16_i32_70 = arith.constant 16 : i32
    %180 = vector.broadcast %c16_i32_70 : i32 to vector<16x128xi32>
    %181 = arith.cmpi slt, %179, %180 : vector<16x128xi32>
    %182 = arith.andi %177, %181 : vector<16x128xi1>
    %c2_i32_71 = arith.constant 2 : i32
    %183 = tpu.dynamic_rotate %92 by %c2_i32_71 dim 1 : vector<16x128xf32>, i32 -> vector<16x128xf32>
    %184 = arith.subf %183, %92 : vector<16x128xf32>
    %185 = math.tanh %184 : vector<16x128xf32>
    %cst_72 = arith.constant 1.000000e+00 : f32
    %186 = vector.broadcast %cst_72 : f32 to vector<16x128xf32>
    %187 = arith.addf %185, %186 : vector<16x128xf32>
    %cst_73 = arith.constant 5.000000e-01 : f32
    %188 = vector.broadcast %cst_73 : f32 to vector<16x128xf32>
    %189 = arith.mulf %188, %187 : vector<16x128xf32>
    %cst_74 = arith.constant 0.000000e+00 : f32
    %190 = vector.broadcast %cst_74 : f32 to vector<16x128xf32>
    %191 = arith.select %182, %189, %190 : vector<16x128xi1>, vector<16x128xf32>
    %c-1_i32_75 = arith.constant -1 : i32
    %192 = vector.broadcast %c-1_i32_75 : i32 to vector<16x128xi32>
    %193 = arith.addi %3, %192 : vector<16x128xi32>
    %c0_i32_76 = arith.constant 0 : i32
    %194 = vector.broadcast %c0_i32_76 : i32 to vector<16x128xi32>
    %195 = arith.cmpi sge, %193, %194 : vector<16x128xi32>
    %c-1_i32_77 = arith.constant -1 : i32
    %196 = vector.broadcast %c-1_i32_77 : i32 to vector<16x128xi32>
    %197 = arith.addi %3, %196 : vector<16x128xi32>
    %c16_i32_78 = arith.constant 16 : i32
    %198 = vector.broadcast %c16_i32_78 : i32 to vector<16x128xi32>
    %199 = arith.cmpi slt, %197, %198 : vector<16x128xi32>
    %200 = arith.andi %195, %199 : vector<16x128xi1>
    %c1_i32_79 = arith.constant 1 : i32
    %201 = tpu.dynamic_rotate %92 by %c1_i32_79 dim 1 : vector<16x128xf32>, i32 -> vector<16x128xf32>
    %202 = arith.subf %201, %92 : vector<16x128xf32>
    %203 = math.tanh %202 : vector<16x128xf32>
    %cst_80 = arith.constant 1.000000e+00 : f32
    %204 = vector.broadcast %cst_80 : f32 to vector<16x128xf32>
    %205 = arith.addf %203, %204 : vector<16x128xf32>
    %cst_81 = arith.constant 5.000000e-01 : f32
    %206 = vector.broadcast %cst_81 : f32 to vector<16x128xf32>
    %207 = arith.mulf %206, %205 : vector<16x128xf32>
    %cst_82 = arith.constant 0.000000e+00 : f32
    %208 = vector.broadcast %cst_82 : f32 to vector<16x128xf32>
    %209 = arith.select %200, %207, %208 : vector<16x128xi1>, vector<16x128xf32>
    %c1_i32_83 = arith.constant 1 : i32
    %210 = vector.broadcast %c1_i32_83 : i32 to vector<16x128xi32>
    %211 = arith.addi %3, %210 : vector<16x128xi32>
    %c0_i32_84 = arith.constant 0 : i32
    %212 = vector.broadcast %c0_i32_84 : i32 to vector<16x128xi32>
    %213 = arith.cmpi sge, %211, %212 : vector<16x128xi32>
    %c1_i32_85 = arith.constant 1 : i32
    %214 = vector.broadcast %c1_i32_85 : i32 to vector<16x128xi32>
    %215 = arith.addi %3, %214 : vector<16x128xi32>
    %c16_i32_86 = arith.constant 16 : i32
    %216 = vector.broadcast %c16_i32_86 : i32 to vector<16x128xi32>
    %217 = arith.cmpi slt, %215, %216 : vector<16x128xi32>
    %218 = arith.andi %213, %217 : vector<16x128xi1>
    %c127_i32_87 = arith.constant 127 : i32
    %219 = tpu.dynamic_rotate %92 by %c127_i32_87 dim 1 : vector<16x128xf32>, i32 -> vector<16x128xf32>
    %220 = arith.subf %219, %92 : vector<16x128xf32>
    %221 = math.tanh %220 : vector<16x128xf32>
    %cst_88 = arith.constant 1.000000e+00 : f32
    %222 = vector.broadcast %cst_88 : f32 to vector<16x128xf32>
    %223 = arith.addf %221, %222 : vector<16x128xf32>
    %cst_89 = arith.constant 5.000000e-01 : f32
    %224 = vector.broadcast %cst_89 : f32 to vector<16x128xf32>
    %225 = arith.mulf %224, %223 : vector<16x128xf32>
    %cst_90 = arith.constant 0.000000e+00 : f32
    %226 = vector.broadcast %cst_90 : f32 to vector<16x128xf32>
    %227 = arith.select %218, %225, %226 : vector<16x128xi1>, vector<16x128xf32>
    %c2_i32_91 = arith.constant 2 : i32
    %228 = vector.broadcast %c2_i32_91 : i32 to vector<16x128xi32>
    %229 = arith.addi %3, %228 : vector<16x128xi32>
    %c0_i32_92 = arith.constant 0 : i32
    %230 = vector.broadcast %c0_i32_92 : i32 to vector<16x128xi32>
    %231 = arith.cmpi sge, %229, %230 : vector<16x128xi32>
    %c2_i32_93 = arith.constant 2 : i32
    %232 = vector.broadcast %c2_i32_93 : i32 to vector<16x128xi32>
    %233 = arith.addi %3, %232 : vector<16x128xi32>
    %c16_i32_94 = arith.constant 16 : i32
    %234 = vector.broadcast %c16_i32_94 : i32 to vector<16x128xi32>
    %235 = arith.cmpi slt, %233, %234 : vector<16x128xi32>
    %236 = arith.andi %231, %235 : vector<16x128xi1>
    %c126_i32 = arith.constant 126 : i32
    %237 = tpu.dynamic_rotate %92 by %c126_i32 dim 1 : vector<16x128xf32>, i32 -> vector<16x128xf32>
    %238 = arith.subf %237, %92 : vector<16x128xf32>
    %239 = math.tanh %238 : vector<16x128xf32>
    %cst_95 = arith.constant 1.000000e+00 : f32
    %240 = vector.broadcast %cst_95 : f32 to vector<16x128xf32>
    %241 = arith.addf %239, %240 : vector<16x128xf32>
    %cst_96 = arith.constant 5.000000e-01 : f32
    %242 = vector.broadcast %cst_96 : f32 to vector<16x128xf32>
    %243 = arith.mulf %242, %241 : vector<16x128xf32>
    %cst_97 = arith.constant 0.000000e+00 : f32
    %244 = vector.broadcast %cst_97 : f32 to vector<16x128xf32>
    %245 = arith.select %236, %243, %244 : vector<16x128xi1>, vector<16x128xf32>
    %246 = arith.mulf %100, %100 : vector<16x128xf32>
    %247 = arith.mulf %101, %101 : vector<16x128xf32>
    %248 = arith.addf %246, %247 : vector<16x128xf32>
    %cst_98 = arith.constant 5.000000e-01 : f32
    %249 = vector.broadcast %cst_98 : f32 to vector<16x128xf32>
    %250 = arith.mulf %249, %248 : vector<16x128xf32>
    %251 = arith.mulf %100, %250 : vector<16x128xf32>
    %252 = arith.mulf %101, %250 : vector<16x128xf32>
    %c2_i32_99 = arith.constant 2 : i32
    %253 = tpu.dynamic_rotate %100 by %c2_i32_99 dim 0 : vector<16x128xf32>, i32 -> vector<16x128xf32>
    %c2_i32_100 = arith.constant 2 : i32
    %254 = tpu.dynamic_rotate %101 by %c2_i32_100 dim 0 : vector<16x128xf32>, i32 -> vector<16x128xf32>
    %255 = arith.mulf %100, %253 : vector<16x128xf32>
    %256 = arith.mulf %101, %254 : vector<16x128xf32>
    %257 = arith.addf %255, %256 : vector<16x128xf32>
    %258 = arith.mulf %119, %257 : vector<16x128xf32>
    %259 = arith.mulf %253, %258 : vector<16x128xf32>
    %260 = arith.addf %251, %259 : vector<16x128xf32>
    %261 = arith.mulf %254, %258 : vector<16x128xf32>
    %262 = arith.addf %252, %261 : vector<16x128xf32>
    %c1_i32_101 = arith.constant 1 : i32
    %263 = tpu.dynamic_rotate %100 by %c1_i32_101 dim 0 : vector<16x128xf32>, i32 -> vector<16x128xf32>
    %c1_i32_102 = arith.constant 1 : i32
    %264 = tpu.dynamic_rotate %101 by %c1_i32_102 dim 0 : vector<16x128xf32>, i32 -> vector<16x128xf32>
    %265 = arith.mulf %100, %263 : vector<16x128xf32>
    %266 = arith.mulf %101, %264 : vector<16x128xf32>
    %267 = arith.addf %265, %266 : vector<16x128xf32>
    %268 = arith.mulf %137, %267 : vector<16x128xf32>
    %269 = arith.mulf %263, %268 : vector<16x128xf32>
    %270 = arith.addf %260, %269 : vector<16x128xf32>
    %271 = arith.mulf %264, %268 : vector<16x128xf32>
    %272 = arith.addf %262, %271 : vector<16x128xf32>
    %c15_i32_103 = arith.constant 15 : i32
    %273 = tpu.dynamic_rotate %100 by %c15_i32_103 dim 0 : vector<16x128xf32>, i32 -> vector<16x128xf32>
    %c15_i32_104 = arith.constant 15 : i32
    %274 = tpu.dynamic_rotate %101 by %c15_i32_104 dim 0 : vector<16x128xf32>, i32 -> vector<16x128xf32>
    %275 = arith.mulf %100, %273 : vector<16x128xf32>
    %276 = arith.mulf %101, %274 : vector<16x128xf32>
    %277 = arith.addf %275, %276 : vector<16x128xf32>
    %278 = arith.mulf %155, %277 : vector<16x128xf32>
    %279 = arith.mulf %273, %278 : vector<16x128xf32>
    %280 = arith.addf %270, %279 : vector<16x128xf32>
    %281 = arith.mulf %274, %278 : vector<16x128xf32>
    %282 = arith.addf %272, %281 : vector<16x128xf32>
    %c14_i32_105 = arith.constant 14 : i32
    %283 = tpu.dynamic_rotate %100 by %c14_i32_105 dim 0 : vector<16x128xf32>, i32 -> vector<16x128xf32>
    %c14_i32_106 = arith.constant 14 : i32
    %284 = tpu.dynamic_rotate %101 by %c14_i32_106 dim 0 : vector<16x128xf32>, i32 -> vector<16x128xf32>
    %285 = arith.mulf %100, %283 : vector<16x128xf32>
    %286 = arith.mulf %101, %284 : vector<16x128xf32>
    %287 = arith.addf %285, %286 : vector<16x128xf32>
    %288 = arith.mulf %173, %287 : vector<16x128xf32>
    %289 = arith.mulf %283, %288 : vector<16x128xf32>
    %290 = arith.addf %280, %289 : vector<16x128xf32>
    %291 = arith.mulf %284, %288 : vector<16x128xf32>
    %292 = arith.addf %282, %291 : vector<16x128xf32>
    %293 = arith.mulf %290, %290 : vector<16x128xf32>
    %294 = arith.mulf %292, %292 : vector<16x128xf32>
    %295 = arith.addf %293, %294 : vector<16x128xf32>
    %cst_107 = arith.constant 0.000000e+00 : f32
    %296 = vector.broadcast %cst_107 : f32 to vector<16x128xf32>
    %297 = arith.cmpf oeq, %295, %296 : vector<16x128xf32>
    %298 = math.rsqrt %295 : vector<16x128xf32>
    %cst_108 = arith.constant 1.000000e+00 : f32
    %299 = vector.broadcast %cst_108 : f32 to vector<16x128xf32>
    %300 = arith.select %297, %299, %298 : vector<16x128xi1>, vector<16x128xf32>
    %301 = arith.mulf %290, %300 : vector<16x128xf32>
    %302 = arith.mulf %292, %300 : vector<16x128xf32>
    %303 = arith.mulf %301, %301 : vector<16x128xf32>
    %304 = arith.mulf %302, %302 : vector<16x128xf32>
    %305 = arith.addf %303, %304 : vector<16x128xf32>
    %cst_109 = arith.constant 5.000000e-01 : f32
    %306 = vector.broadcast %cst_109 : f32 to vector<16x128xf32>
    %307 = arith.mulf %306, %305 : vector<16x128xf32>
    %308 = arith.mulf %301, %307 : vector<16x128xf32>
    %309 = arith.mulf %302, %307 : vector<16x128xf32>
    %c2_i32_110 = arith.constant 2 : i32
    %310 = tpu.dynamic_rotate %301 by %c2_i32_110 dim 1 : vector<16x128xf32>, i32 -> vector<16x128xf32>
    %c2_i32_111 = arith.constant 2 : i32
    %311 = tpu.dynamic_rotate %302 by %c2_i32_111 dim 1 : vector<16x128xf32>, i32 -> vector<16x128xf32>
    %312 = arith.mulf %301, %310 : vector<16x128xf32>
    %313 = arith.mulf %302, %311 : vector<16x128xf32>
    %314 = arith.addf %312, %313 : vector<16x128xf32>
    %315 = arith.mulf %191, %314 : vector<16x128xf32>
    %316 = arith.mulf %310, %315 : vector<16x128xf32>
    %317 = arith.addf %308, %316 : vector<16x128xf32>
    %318 = arith.mulf %311, %315 : vector<16x128xf32>
    %319 = arith.addf %309, %318 : vector<16x128xf32>
    %c1_i32_112 = arith.constant 1 : i32
    %320 = tpu.dynamic_rotate %301 by %c1_i32_112 dim 1 : vector<16x128xf32>, i32 -> vector<16x128xf32>
    %c1_i32_113 = arith.constant 1 : i32
    %321 = tpu.dynamic_rotate %302 by %c1_i32_113 dim 1 : vector<16x128xf32>, i32 -> vector<16x128xf32>
    %322 = arith.mulf %301, %320 : vector<16x128xf32>
    %323 = arith.mulf %302, %321 : vector<16x128xf32>
    %324 = arith.addf %322, %323 : vector<16x128xf32>
    %325 = arith.mulf %209, %324 : vector<16x128xf32>
    %326 = arith.mulf %320, %325 : vector<16x128xf32>
    %327 = arith.addf %317, %326 : vector<16x128xf32>
    %328 = arith.mulf %321, %325 : vector<16x128xf32>
    %329 = arith.addf %319, %328 : vector<16x128xf32>
    %c127_i32_114 = arith.constant 127 : i32
    %330 = tpu.dynamic_rotate %301 by %c127_i32_114 dim 1 : vector<16x128xf32>, i32 -> vector<16x128xf32>
    %c127_i32_115 = arith.constant 127 : i32
    %331 = tpu.dynamic_rotate %302 by %c127_i32_115 dim 1 : vector<16x128xf32>, i32 -> vector<16x128xf32>
    %332 = arith.mulf %301, %330 : vector<16x128xf32>
    %333 = arith.mulf %302, %331 : vector<16x128xf32>
    %334 = arith.addf %332, %333 : vector<16x128xf32>
    %335 = arith.mulf %227, %334 : vector<16x128xf32>
    %336 = arith.mulf %330, %335 : vector<16x128xf32>
    %337 = arith.addf %327, %336 : vector<16x128xf32>
    %338 = arith.mulf %331, %335 : vector<16x128xf32>
    %339 = arith.addf %329, %338 : vector<16x128xf32>
    %c126_i32_116 = arith.constant 126 : i32
    %340 = tpu.dynamic_rotate %301 by %c126_i32_116 dim 1 : vector<16x128xf32>, i32 -> vector<16x128xf32>
    %c126_i32_117 = arith.constant 126 : i32
    %341 = tpu.dynamic_rotate %302 by %c126_i32_117 dim 1 : vector<16x128xf32>, i32 -> vector<16x128xf32>
    %342 = arith.mulf %301, %340 : vector<16x128xf32>
    %343 = arith.mulf %302, %341 : vector<16x128xf32>
    %344 = arith.addf %342, %343 : vector<16x128xf32>
    %345 = arith.mulf %245, %344 : vector<16x128xf32>
    %346 = arith.mulf %340, %345 : vector<16x128xf32>
    %347 = arith.addf %337, %346 : vector<16x128xf32>
    %348 = arith.mulf %341, %345 : vector<16x128xf32>
    %349 = arith.addf %339, %348 : vector<16x128xf32>
    %350 = arith.mulf %347, %347 : vector<16x128xf32>
    %351 = arith.mulf %349, %349 : vector<16x128xf32>
    %352 = arith.addf %350, %351 : vector<16x128xf32>
    %cst_118 = arith.constant 0.000000e+00 : f32
    %353 = vector.broadcast %cst_118 : f32 to vector<16x128xf32>
    %354 = arith.cmpf oeq, %352, %353 : vector<16x128xf32>
    %355 = math.rsqrt %352 : vector<16x128xf32>
    %cst_119 = arith.constant 1.000000e+00 : f32
    %356 = vector.broadcast %cst_119 : f32 to vector<16x128xf32>
    %357 = arith.select %354, %356, %355 : vector<16x128xi1>, vector<16x128xf32>
    %358 = arith.mulf %347, %357 : vector<16x128xf32>
    %359 = arith.mulf %349, %357 : vector<16x128xf32>
    %360 = arith.mulf %358, %358 : vector<16x128xf32>
    %361 = arith.mulf %359, %359 : vector<16x128xf32>
    %362 = arith.addf %360, %361 : vector<16x128xf32>
    %cst_120 = arith.constant 5.000000e-01 : f32
    %363 = vector.broadcast %cst_120 : f32 to vector<16x128xf32>
    %364 = arith.mulf %363, %362 : vector<16x128xf32>
    %365 = arith.mulf %358, %364 : vector<16x128xf32>
    %366 = arith.mulf %359, %364 : vector<16x128xf32>
    %c2_i32_121 = arith.constant 2 : i32
    %367 = tpu.dynamic_rotate %358 by %c2_i32_121 dim 0 : vector<16x128xf32>, i32 -> vector<16x128xf32>
    %c2_i32_122 = arith.constant 2 : i32
    %368 = tpu.dynamic_rotate %359 by %c2_i32_122 dim 0 : vector<16x128xf32>, i32 -> vector<16x128xf32>
    %369 = arith.mulf %358, %367 : vector<16x128xf32>
    %370 = arith.mulf %359, %368 : vector<16x128xf32>
    %371 = arith.addf %369, %370 : vector<16x128xf32>
    %372 = arith.mulf %119, %371 : vector<16x128xf32>
    %373 = arith.mulf %367, %372 : vector<16x128xf32>
    %374 = arith.addf %365, %373 : vector<16x128xf32>
    %375 = arith.mulf %368, %372 : vector<16x128xf32>
    %376 = arith.addf %366, %375 : vector<16x128xf32>
    %c1_i32_123 = arith.constant 1 : i32
    %377 = tpu.dynamic_rotate %358 by %c1_i32_123 dim 0 : vector<16x128xf32>, i32 -> vector<16x128xf32>
    %c1_i32_124 = arith.constant 1 : i32
    %378 = tpu.dynamic_rotate %359 by %c1_i32_124 dim 0 : vector<16x128xf32>, i32 -> vector<16x128xf32>
    %379 = arith.mulf %358, %377 : vector<16x128xf32>
    %380 = arith.mulf %359, %378 : vector<16x128xf32>
    %381 = arith.addf %379, %380 : vector<16x128xf32>
    %382 = arith.mulf %137, %381 : vector<16x128xf32>
    %383 = arith.mulf %377, %382 : vector<16x128xf32>
    %384 = arith.addf %374, %383 : vector<16x128xf32>
    %385 = arith.mulf %378, %382 : vector<16x128xf32>
    %386 = arith.addf %376, %385 : vector<16x128xf32>
    %c15_i32_125 = arith.constant 15 : i32
    %387 = tpu.dynamic_rotate %358 by %c15_i32_125 dim 0 : vector<16x128xf32>, i32 -> vector<16x128xf32>
    %c15_i32_126 = arith.constant 15 : i32
    %388 = tpu.dynamic_rotate %359 by %c15_i32_126 dim 0 : vector<16x128xf32>, i32 -> vector<16x128xf32>
    %389 = arith.mulf %358, %387 : vector<16x128xf32>
    %390 = arith.mulf %359, %388 : vector<16x128xf32>
    %391 = arith.addf %389, %390 : vector<16x128xf32>
    %392 = arith.mulf %155, %391 : vector<16x128xf32>
    %393 = arith.mulf %387, %392 : vector<16x128xf32>
    %394 = arith.addf %384, %393 : vector<16x128xf32>
    %395 = arith.mulf %388, %392 : vector<16x128xf32>
    %396 = arith.addf %386, %395 : vector<16x128xf32>
    %c14_i32_127 = arith.constant 14 : i32
    %397 = tpu.dynamic_rotate %358 by %c14_i32_127 dim 0 : vector<16x128xf32>, i32 -> vector<16x128xf32>
    %c14_i32_128 = arith.constant 14 : i32
    %398 = tpu.dynamic_rotate %359 by %c14_i32_128 dim 0 : vector<16x128xf32>, i32 -> vector<16x128xf32>
    %399 = arith.mulf %358, %397 : vector<16x128xf32>
    %400 = arith.mulf %359, %398 : vector<16x128xf32>
    %401 = arith.addf %399, %400 : vector<16x128xf32>
    %402 = arith.mulf %173, %401 : vector<16x128xf32>
    %403 = arith.mulf %397, %402 : vector<16x128xf32>
    %404 = arith.addf %394, %403 : vector<16x128xf32>
    %405 = arith.mulf %398, %402 : vector<16x128xf32>
    %406 = arith.addf %396, %405 : vector<16x128xf32>
    %407 = arith.mulf %404, %404 : vector<16x128xf32>
    %408 = arith.mulf %406, %406 : vector<16x128xf32>
    %409 = arith.addf %407, %408 : vector<16x128xf32>
    %cst_129 = arith.constant 0.000000e+00 : f32
    %410 = vector.broadcast %cst_129 : f32 to vector<16x128xf32>
    %411 = arith.cmpf oeq, %409, %410 : vector<16x128xf32>
    %412 = math.rsqrt %409 : vector<16x128xf32>
    %cst_130 = arith.constant 1.000000e+00 : f32
    %413 = vector.broadcast %cst_130 : f32 to vector<16x128xf32>
    %414 = arith.select %411, %413, %412 : vector<16x128xi1>, vector<16x128xf32>
    %415 = arith.mulf %404, %414 : vector<16x128xf32>
    %416 = arith.mulf %406, %414 : vector<16x128xf32>
    %417 = arith.mulf %415, %415 : vector<16x128xf32>
    %418 = arith.mulf %416, %416 : vector<16x128xf32>
    %419 = arith.addf %417, %418 : vector<16x128xf32>
    %cst_131 = arith.constant 5.000000e-01 : f32
    %420 = vector.broadcast %cst_131 : f32 to vector<16x128xf32>
    %421 = arith.mulf %420, %419 : vector<16x128xf32>
    %422 = arith.mulf %415, %421 : vector<16x128xf32>
    %423 = arith.mulf %416, %421 : vector<16x128xf32>
    %c2_i32_132 = arith.constant 2 : i32
    %424 = tpu.dynamic_rotate %415 by %c2_i32_132 dim 1 : vector<16x128xf32>, i32 -> vector<16x128xf32>
    %c2_i32_133 = arith.constant 2 : i32
    %425 = tpu.dynamic_rotate %416 by %c2_i32_133 dim 1 : vector<16x128xf32>, i32 -> vector<16x128xf32>
    %426 = arith.mulf %415, %424 : vector<16x128xf32>
    %427 = arith.mulf %416, %425 : vector<16x128xf32>
    %428 = arith.addf %426, %427 : vector<16x128xf32>
    %429 = arith.mulf %191, %428 : vector<16x128xf32>
    %430 = arith.mulf %424, %429 : vector<16x128xf32>
    %431 = arith.addf %422, %430 : vector<16x128xf32>
    %432 = arith.mulf %425, %429 : vector<16x128xf32>
    %433 = arith.addf %423, %432 : vector<16x128xf32>
    %c1_i32_134 = arith.constant 1 : i32
    %434 = tpu.dynamic_rotate %415 by %c1_i32_134 dim 1 : vector<16x128xf32>, i32 -> vector<16x128xf32>
    %c1_i32_135 = arith.constant 1 : i32
    %435 = tpu.dynamic_rotate %416 by %c1_i32_135 dim 1 : vector<16x128xf32>, i32 -> vector<16x128xf32>
    %436 = arith.mulf %415, %434 : vector<16x128xf32>
    %437 = arith.mulf %416, %435 : vector<16x128xf32>
    %438 = arith.addf %436, %437 : vector<16x128xf32>
    %439 = arith.mulf %209, %438 : vector<16x128xf32>
    %440 = arith.mulf %434, %439 : vector<16x128xf32>
    %441 = arith.addf %431, %440 : vector<16x128xf32>
    %442 = arith.mulf %435, %439 : vector<16x128xf32>
    %443 = arith.addf %433, %442 : vector<16x128xf32>
    %c127_i32_136 = arith.constant 127 : i32
    %444 = tpu.dynamic_rotate %415 by %c127_i32_136 dim 1 : vector<16x128xf32>, i32 -> vector<16x128xf32>
    %c127_i32_137 = arith.constant 127 : i32
    %445 = tpu.dynamic_rotate %416 by %c127_i32_137 dim 1 : vector<16x128xf32>, i32 -> vector<16x128xf32>
    %446 = arith.mulf %415, %444 : vector<16x128xf32>
    %447 = arith.mulf %416, %445 : vector<16x128xf32>
    %448 = arith.addf %446, %447 : vector<16x128xf32>
    %449 = arith.mulf %227, %448 : vector<16x128xf32>
    %450 = arith.mulf %444, %449 : vector<16x128xf32>
    %451 = arith.addf %441, %450 : vector<16x128xf32>
    %452 = arith.mulf %445, %449 : vector<16x128xf32>
    %453 = arith.addf %443, %452 : vector<16x128xf32>
    %c126_i32_138 = arith.constant 126 : i32
    %454 = tpu.dynamic_rotate %415 by %c126_i32_138 dim 1 : vector<16x128xf32>, i32 -> vector<16x128xf32>
    %c126_i32_139 = arith.constant 126 : i32
    %455 = tpu.dynamic_rotate %416 by %c126_i32_139 dim 1 : vector<16x128xf32>, i32 -> vector<16x128xf32>
    %456 = arith.mulf %415, %454 : vector<16x128xf32>
    %457 = arith.mulf %416, %455 : vector<16x128xf32>
    %458 = arith.addf %456, %457 : vector<16x128xf32>
    %459 = arith.mulf %245, %458 : vector<16x128xf32>
    %460 = arith.mulf %454, %459 : vector<16x128xf32>
    %461 = arith.addf %451, %460 : vector<16x128xf32>
    %462 = arith.mulf %455, %459 : vector<16x128xf32>
    %463 = arith.addf %453, %462 : vector<16x128xf32>
    %464 = arith.mulf %461, %461 : vector<16x128xf32>
    %465 = arith.mulf %463, %463 : vector<16x128xf32>
    %466 = arith.addf %464, %465 : vector<16x128xf32>
    %cst_140 = arith.constant 0.000000e+00 : f32
    %467 = vector.broadcast %cst_140 : f32 to vector<16x128xf32>
    %468 = arith.cmpf oeq, %466, %467 : vector<16x128xf32>
    %469 = math.rsqrt %466 : vector<16x128xf32>
    %cst_141 = arith.constant 1.000000e+00 : f32
    %470 = vector.broadcast %cst_141 : f32 to vector<16x128xf32>
    %471 = arith.select %468, %470, %469 : vector<16x128xi1>, vector<16x128xf32>
    %472 = arith.mulf %461, %471 : vector<16x128xf32>
    %473 = arith.mulf %463, %471 : vector<16x128xf32>
    %474 = arith.mulf %472, %472 : vector<16x128xf32>
    %475 = arith.mulf %473, %473 : vector<16x128xf32>
    %476 = arith.addf %474, %475 : vector<16x128xf32>
    %cst_142 = arith.constant 5.000000e-01 : f32
    %477 = vector.broadcast %cst_142 : f32 to vector<16x128xf32>
    %478 = arith.mulf %477, %476 : vector<16x128xf32>
    %479 = arith.mulf %472, %478 : vector<16x128xf32>
    %480 = arith.mulf %473, %478 : vector<16x128xf32>
    %c2_i32_143 = arith.constant 2 : i32
    %481 = tpu.dynamic_rotate %472 by %c2_i32_143 dim 0 : vector<16x128xf32>, i32 -> vector<16x128xf32>
    %c2_i32_144 = arith.constant 2 : i32
    %482 = tpu.dynamic_rotate %473 by %c2_i32_144 dim 0 : vector<16x128xf32>, i32 -> vector<16x128xf32>
    %483 = arith.mulf %472, %481 : vector<16x128xf32>
    %484 = arith.mulf %473, %482 : vector<16x128xf32>
    %485 = arith.addf %483, %484 : vector<16x128xf32>
    %486 = arith.mulf %119, %485 : vector<16x128xf32>
    %487 = arith.mulf %481, %486 : vector<16x128xf32>
    %488 = arith.addf %479, %487 : vector<16x128xf32>
    %489 = arith.mulf %482, %486 : vector<16x128xf32>
    %490 = arith.addf %480, %489 : vector<16x128xf32>
    %c1_i32_145 = arith.constant 1 : i32
    %491 = tpu.dynamic_rotate %472 by %c1_i32_145 dim 0 : vector<16x128xf32>, i32 -> vector<16x128xf32>
    %c1_i32_146 = arith.constant 1 : i32
    %492 = tpu.dynamic_rotate %473 by %c1_i32_146 dim 0 : vector<16x128xf32>, i32 -> vector<16x128xf32>
    %493 = arith.mulf %472, %491 : vector<16x128xf32>
    %494 = arith.mulf %473, %492 : vector<16x128xf32>
    %495 = arith.addf %493, %494 : vector<16x128xf32>
    %496 = arith.mulf %137, %495 : vector<16x128xf32>
    %497 = arith.mulf %491, %496 : vector<16x128xf32>
    %498 = arith.addf %488, %497 : vector<16x128xf32>
    %499 = arith.mulf %492, %496 : vector<16x128xf32>
    %500 = arith.addf %490, %499 : vector<16x128xf32>
    %c15_i32_147 = arith.constant 15 : i32
    %501 = tpu.dynamic_rotate %472 by %c15_i32_147 dim 0 : vector<16x128xf32>, i32 -> vector<16x128xf32>
    %c15_i32_148 = arith.constant 15 : i32
    %502 = tpu.dynamic_rotate %473 by %c15_i32_148 dim 0 : vector<16x128xf32>, i32 -> vector<16x128xf32>
    %503 = arith.mulf %472, %501 : vector<16x128xf32>
    %504 = arith.mulf %473, %502 : vector<16x128xf32>
    %505 = arith.addf %503, %504 : vector<16x128xf32>
    %506 = arith.mulf %155, %505 : vector<16x128xf32>
    %507 = arith.mulf %501, %506 : vector<16x128xf32>
    %508 = arith.addf %498, %507 : vector<16x128xf32>
    %509 = arith.mulf %502, %506 : vector<16x128xf32>
    %510 = arith.addf %500, %509 : vector<16x128xf32>
    %c14_i32_149 = arith.constant 14 : i32
    %511 = tpu.dynamic_rotate %472 by %c14_i32_149 dim 0 : vector<16x128xf32>, i32 -> vector<16x128xf32>
    %c14_i32_150 = arith.constant 14 : i32
    %512 = tpu.dynamic_rotate %473 by %c14_i32_150 dim 0 : vector<16x128xf32>, i32 -> vector<16x128xf32>
    %513 = arith.mulf %472, %511 : vector<16x128xf32>
    %514 = arith.mulf %473, %512 : vector<16x128xf32>
    %515 = arith.addf %513, %514 : vector<16x128xf32>
    %516 = arith.mulf %173, %515 : vector<16x128xf32>
    %517 = arith.mulf %511, %516 : vector<16x128xf32>
    %518 = arith.addf %508, %517 : vector<16x128xf32>
    %519 = arith.mulf %512, %516 : vector<16x128xf32>
    %520 = arith.addf %510, %519 : vector<16x128xf32>
    %521 = arith.mulf %518, %518 : vector<16x128xf32>
    %522 = arith.mulf %520, %520 : vector<16x128xf32>
    %523 = arith.addf %521, %522 : vector<16x128xf32>
    %cst_151 = arith.constant 0.000000e+00 : f32
    %524 = vector.broadcast %cst_151 : f32 to vector<16x128xf32>
    %525 = arith.cmpf oeq, %523, %524 : vector<16x128xf32>
    %526 = math.rsqrt %523 : vector<16x128xf32>
    %cst_152 = arith.constant 1.000000e+00 : f32
    %527 = vector.broadcast %cst_152 : f32 to vector<16x128xf32>
    %528 = arith.select %525, %527, %526 : vector<16x128xi1>, vector<16x128xf32>
    %529 = arith.mulf %518, %528 : vector<16x128xf32>
    %530 = arith.mulf %520, %528 : vector<16x128xf32>
    %531 = arith.mulf %529, %529 : vector<16x128xf32>
    %532 = arith.mulf %530, %530 : vector<16x128xf32>
    %533 = arith.addf %531, %532 : vector<16x128xf32>
    %cst_153 = arith.constant 5.000000e-01 : f32
    %534 = vector.broadcast %cst_153 : f32 to vector<16x128xf32>
    %535 = arith.mulf %534, %533 : vector<16x128xf32>
    %536 = arith.mulf %529, %535 : vector<16x128xf32>
    %537 = arith.mulf %530, %535 : vector<16x128xf32>
    %c2_i32_154 = arith.constant 2 : i32
    %538 = tpu.dynamic_rotate %529 by %c2_i32_154 dim 1 : vector<16x128xf32>, i32 -> vector<16x128xf32>
    %c2_i32_155 = arith.constant 2 : i32
    %539 = tpu.dynamic_rotate %530 by %c2_i32_155 dim 1 : vector<16x128xf32>, i32 -> vector<16x128xf32>
    %540 = arith.mulf %529, %538 : vector<16x128xf32>
    %541 = arith.mulf %530, %539 : vector<16x128xf32>
    %542 = arith.addf %540, %541 : vector<16x128xf32>
    %543 = arith.mulf %191, %542 : vector<16x128xf32>
    %544 = arith.mulf %538, %543 : vector<16x128xf32>
    %545 = arith.addf %536, %544 : vector<16x128xf32>
    %546 = arith.mulf %539, %543 : vector<16x128xf32>
    %547 = arith.addf %537, %546 : vector<16x128xf32>
    %c1_i32_156 = arith.constant 1 : i32
    %548 = tpu.dynamic_rotate %529 by %c1_i32_156 dim 1 : vector<16x128xf32>, i32 -> vector<16x128xf32>
    %c1_i32_157 = arith.constant 1 : i32
    %549 = tpu.dynamic_rotate %530 by %c1_i32_157 dim 1 : vector<16x128xf32>, i32 -> vector<16x128xf32>
    %550 = arith.mulf %529, %548 : vector<16x128xf32>
    %551 = arith.mulf %530, %549 : vector<16x128xf32>
    %552 = arith.addf %550, %551 : vector<16x128xf32>
    %553 = arith.mulf %209, %552 : vector<16x128xf32>
    %554 = arith.mulf %548, %553 : vector<16x128xf32>
    %555 = arith.addf %545, %554 : vector<16x128xf32>
    %556 = arith.mulf %549, %553 : vector<16x128xf32>
    %557 = arith.addf %547, %556 : vector<16x128xf32>
    %c127_i32_158 = arith.constant 127 : i32
    %558 = tpu.dynamic_rotate %529 by %c127_i32_158 dim 1 : vector<16x128xf32>, i32 -> vector<16x128xf32>
    %c127_i32_159 = arith.constant 127 : i32
    %559 = tpu.dynamic_rotate %530 by %c127_i32_159 dim 1 : vector<16x128xf32>, i32 -> vector<16x128xf32>
    %560 = arith.mulf %529, %558 : vector<16x128xf32>
    %561 = arith.mulf %530, %559 : vector<16x128xf32>
    %562 = arith.addf %560, %561 : vector<16x128xf32>
    %563 = arith.mulf %227, %562 : vector<16x128xf32>
    %564 = arith.mulf %558, %563 : vector<16x128xf32>
    %565 = arith.addf %555, %564 : vector<16x128xf32>
    %566 = arith.mulf %559, %563 : vector<16x128xf32>
    %567 = arith.addf %557, %566 : vector<16x128xf32>
    %c126_i32_160 = arith.constant 126 : i32
    %568 = tpu.dynamic_rotate %529 by %c126_i32_160 dim 1 : vector<16x128xf32>, i32 -> vector<16x128xf32>
    %c126_i32_161 = arith.constant 126 : i32
    %569 = tpu.dynamic_rotate %530 by %c126_i32_161 dim 1 : vector<16x128xf32>, i32 -> vector<16x128xf32>
    %570 = arith.mulf %529, %568 : vector<16x128xf32>
    %571 = arith.mulf %530, %569 : vector<16x128xf32>
    %572 = arith.addf %570, %571 : vector<16x128xf32>
    %573 = arith.mulf %245, %572 : vector<16x128xf32>
    %574 = arith.mulf %568, %573 : vector<16x128xf32>
    %575 = arith.addf %565, %574 : vector<16x128xf32>
    %576 = arith.mulf %569, %573 : vector<16x128xf32>
    %577 = arith.addf %567, %576 : vector<16x128xf32>
    %578 = arith.mulf %575, %575 : vector<16x128xf32>
    %579 = arith.mulf %577, %577 : vector<16x128xf32>
    %580 = arith.addf %578, %579 : vector<16x128xf32>
    %cst_162 = arith.constant 0.000000e+00 : f32
    %581 = vector.broadcast %cst_162 : f32 to vector<16x128xf32>
    %582 = arith.cmpf oeq, %580, %581 : vector<16x128xf32>
    %583 = math.rsqrt %580 : vector<16x128xf32>
    %cst_163 = arith.constant 1.000000e+00 : f32
    %584 = vector.broadcast %cst_163 : f32 to vector<16x128xf32>
    %585 = arith.select %582, %584, %583 : vector<16x128xi1>, vector<16x128xf32>
    %586 = arith.mulf %575, %585 : vector<16x128xf32>
    %587 = arith.mulf %577, %585 : vector<16x128xf32>
    %c0_164 = arith.constant 0 : index
    %c0_165 = arith.constant 0 : index
    %c0_166 = arith.constant 0 : index
    %c0_167 = arith.constant 0 : index
    %588 = vector.load %arg3[%c0_164, %c0_165, %c0_166, %c0_167] : memref<1x2x16x128xf32, #tpu.memory_space<vmem>>, vector<1x1x16x128xf32>
    %589 = vector.shape_cast %588 : vector<1x1x16x128xf32> to vector<16x128xf32>
    %590 = vector.shape_cast %586 : vector<16x128xf32> to vector<1x1x16x128xf32>
    tpu.vector_store %arg3[%c0_164, %c0_165, %c0_166, %c0_167], %590 {strides = array<i32>} : memref<1x2x16x128xf32, #tpu.memory_space<vmem>>, vector<1x1x16x128xf32>,
    %c0_168 = arith.constant 0 : index
    %c1 = arith.constant 1 : index
    %c0_169 = arith.constant 0 : index
    %c0_170 = arith.constant 0 : index
    %591 = vector.load %arg3[%c0_168, %c1, %c0_169, %c0_170] : memref<1x2x16x128xf32, #tpu.memory_space<vmem>>, vector<1x1x16x128xf32>
    %592 = vector.shape_cast %591 : vector<1x1x16x128xf32> to vector<16x128xf32>
    %593 = vector.shape_cast %587 : vector<16x128xf32> to vector<1x1x16x128xf32>
    tpu.vector_store %arg3[%c0_168, %c1, %c0_169, %c0_170], %593 {strides = array<i32>} : memref<1x2x16x128xf32, #tpu.memory_space<vmem>>, vector<1x1x16x128xf32>,
    return
  }
  func.func @transform_0(%arg0: i32) -> (i32, i32) {
    %c0_i32 = arith.constant 0 : i32
    %c0_i32_0 = arith.constant 0 : i32
    %c0_i32_1 = arith.constant 0 : i32
    return %c0_i32, %c0_i32_0 : i32, i32
  }
  func.func @transform_1(%arg0: i32) -> (i32, i32, i32) {
    %c0_i32 = arith.constant 0 : i32
    %c0_i32_0 = arith.constant 0 : i32
    %c0_i32_1 = arith.constant 0 : i32
    return %arg0, %c0_i32, %c0_i32_0 : i32, i32, i32
  }
  func.func @transform_2(%arg0: i32) -> (i32, i32, i32, i32) {
    %c0_i32 = arith.constant 0 : i32
    %c0_i32_0 = arith.constant 0 : i32
    %c0_i32_1 = arith.constant 0 : i32
    %c0_i32_2 = arith.constant 0 : i32
    return %arg0, %c0_i32, %c0_i32_0, %c0_i32_1 : i32, i32, i32, i32
  }
}

</mosaic_0001>

<bundles_post_ra>
// kernel: etf_forward.2
= control target key start
LH: loop header
LB: loop body
LE: loop exit
PB: predicated region body
PF: predicated region fallthrough
CT: control target
= control target key end

     0   :  { %s341_s6 = smov 0   ;;  %s381_s0 = inlined_call_operand.vmem [shape: f32[2,16,128], index: 0, kind: input, shape index: {}]   ;;  %s382_s1 = inlined_call_operand.vmem [shape: f32[2,1,1], index: 1, kind: output, shape index: {}]  }
   0x1 LB: > { %s295_s7 = sadd.s32 4294967295, %s327_s6   ;;  %p299_p0 = scmp.ge.s32.totalorder %s327_s6, 1  ;;  %s327_s6 = sphi %s341_s6, %s11_s6  }
   0x2   : > { %p87_p1 = scmp.lt.s32.totalorder %s327_s6, 3 }
   0x4   : > { %p88_p2 = pnand %p299_p0, %p87_p1 }
   0x5   : > { %p105_p3 = scmp.lt.s32.totalorder (!%p88_p2), %s295_s7, 1  ;;  %s329_s12 = smov (!%p88_p2), 127  }
   0x6   : > { %91 = sbr.rel (%p88_p2) target bundleno = 365 (0x16d), region = 24  ;;  %s330_s13 = smov (!%p88_p2), 1  }
   0xb   : > { %v115_v0 = vlaneseq  ;;  %s386_s7 = smov (!%p105_p3, %s295_s7), 1  ;;  %vm246_vm13 = vcmask 0  }
   0xc   : > { %s304_s8 = sshll.u32 %s386_s7, 4  ;;  %s112_s16 = scalar_lea.vmem %s382_s1, %s386_s7 }
   0xd   : > { %v116_v1 = vshrl.u32 %v115_v0, 7  ;;  %s109_s11 = scalar_lea.vmem %s381_s0, %s304_s8  ;;  %v357_v25 = vand.u32 127, %v115_v0 }
   0xe   : > { %v113_v4 = vld [vmem:[%s109_s11] sm:$0xff]  ;;  %v114_v5 = vld [vmem:[%s109_s11 + $0x8] sm:$0xff] }
   0xf   : > { %v125_v2 = vadd.s32 4294967295, %v116_v1  ;;  %v117_v3 = vadd.s32 8, %v116_v1  ;;  %vm122_vm0 = vcmp.lt.s32.totalorder %v116_v1, 1  ;;  %vm137_vm2 = vcmp.lt.s32.totalorder %v116_v1, 7 }
  0x10   : > { %v120_v7 = vrot.slane %v113_v4, 7  ;;  %v121_v8 = vrot.slane %v114_v5, 7  ;;  %v135_v9 = vrot.slane %v113_v4, 1  ;;  %v136_v10 = vrot.slane %v114_v5, 1 }
  0x11   : > { %vm127_vm1 = vcmp.ge.s32.totalorder %v125_v2, 0  ;;  %v141_v6 = vadd.s32 1, %v117_v3  ;;  %v178_v11 = vmul.f32 2.0, %v113_v4  ;;  %v179_v18 = vmul.f32 2.0, %v114_v5 }
  0x12   : > { %v124_v12 = vsel %vm122_vm0, %v121_v8, %v120_v7  ;;  %v138_v13 = vsel %vm137_vm2, %v135_v9, %v136_v10  ;;  %v139_v16 = vsel %vm137_vm2, %v136_v10, %v135_v9  ;;  %v123_v20 = vsel %vm122_vm0, %v120_v7, %v121_v8 }
  0x13   : > { %v133_v14 = vsel %vm127_vm1, %v124_v12, 0.0  ;;  %vm145_vm3 = vcmp.lt.s32.totalorder %v141_v6, 16  ;;  %v181_v23 = vadd.f32 %v179_v18, %v123_v20  ;;  %v156_v26 = vadd.s32 4294967295, %v357_v25 }
  0x14   : > { %v150_v15 = vsub.f32 %v138_v13, %v133_v14  ;;  %v180_v17 = vadd.f32 %v178_v11, %v133_v14  ;;  %v149_v21 = vsel %vm145_vm3, %v139_v16, 0.0  ;;  %v170_v31 = vadd.s32 1, %v357_v25 }
  0x15   : > { %v151_v22 = vsub.f32 %v149_v21, %v123_v20  ;;  %v183_v24 = vadd.f32 %v181_v23, %v149_v21  ;;  %vm157_vm4 = vcmp.ge.s32.totalorder %v156_v26, 0  ;;  %vm158_vm5 = vcmp.lt.s32.totalorder %v156_v26, 16 }
  0x16   : > { %166 = vrot.lane.b32.xlu1 %v150_v15, %s329_s12  ;;  %152 = vrot.lane.b32.xlu0 %v150_v15, %s330_s13  ;;  %v182_v19 = vadd.f32 %v180_v17, %v138_v13  ;;  %vm360_vm6 = vmand %vm157_vm4, %vm158_vm5  ;;  %v162_v32 = vmul.f32 2.0, %v150_v15  ;;  %vm172_vm7 = vcmp.lt.s32.totalorder %v170_v31, 16  ;;  %vm230_vm9 = vcmp.lt.s32.totalorder %v357_v25, 16 }
  0x17   : > { %v163_v35 = vmul.f32 2.0, %v151_v22 }
  0x18   : > { %184 = vrot.lane.b32.xlu2 %v182_v19, %s329_s12 }
  0x1e   : > { %168 = vrot.lane.b32.xlu1 %v151_v22, %s329_s12  ;;  %154 = vrot.lane.b32.xlu0 %v151_v22, %s330_s13 }
  0x20   : > { %186 = vrot.lane.b32.xlu2 %v183_v24, %s329_s12 }
  0x26   : > { %192 = vrot.lane.b32.xlu1 %v183_v24, %s330_s13  ;;  %190 = vrot.lane.b32.xlu0 %v182_v19, %s330_s13 }
  0x72   : > { %v185_v29 = vpop.permute.xlu2 %184 }
  0x73   : > { %v188_v48 = vsel %vm172_vm7, %v185_v29, 0.0 }
  0x7a   : > { %v187_v40 = vpop.permute.xlu2 %186 }
  0x7b   : > { %v189_v43 = vsel %vm172_vm7, %v187_v40, 0.0 }
  0x88   : > { %v167_v27 = vpop.permute.xlu1 %166  ;;  %v153_v28 = vpop.permute.xlu0 %152 }
  0x89   : > { %v160_v36 = vsel %vm360_vm6, %v153_v28, 0.0  ;;  %v174_v41 = vsel %vm172_vm7, %v167_v27, 0.0 }
  0x8a   : > { %v164_v38 = vadd.f32 %v162_v32, %v160_v36 }
  0x8c   : > { %v176_v44 = vadd.f32 %v174_v41, %v164_v38 }
  0x8e   : > { %v198_v53 = vmul.f32 %v176_v44, %v176_v44 }
  0x90   : > { %v169_v33 = vpop.permute.xlu1 %168  ;;  %v155_v34 = vpop.permute.xlu0 %154 }
  0x91   : > { %v161_v37 = vsel %vm360_vm6, %v155_v34, 0.0  ;;  %v175_v42 = vsel %vm172_vm7, %v169_v33, 0.0 }
  0x92   : > { %v165_v39 = vadd.f32 %v163_v35, %v161_v37 }
  0x94   : > { %v177_v45 = vadd.f32 %v175_v42, %v165_v39 }
  0x96   : > { %v199_v54 = vmul.f32 %v177_v45, %v177_v45 }
  0x98   : > { %v193_v46 = vpop.permute.xlu1 %192  ;;  %v191_v47 = vpop.permute.xlu0 %190 }
  0x99   : > { %v195_v49 = vsel %vm360_vm6, %v193_v46, 0.0  ;;  %v194_v50 = vsel %vm360_vm6, %v191_v47, 0.0 }
  0x9a   : > { %v197_v51 = vsub.f32 %v189_v43, %v195_v49  ;;  %v196_v52 = vsub.f32 %v188_v48, %v194_v50 }
  0x9c   : > { %v201_v55 = vmul.f32 %v197_v51, %v197_v51  ;;  %v200_v56 = vmul.f32 %v196_v52, %v196_v52 }
  0x9e   : > { %v203_v57 = vadd.f32 %v201_v55, %v199_v54  ;;  %v202_v58 = vadd.f32 %v200_v56, %v198_v53 }
  0xa0   : > { %317 = vrsqrt.f32 %v202_v58  ;;  %vm211_vm8 = vcmp.eq.f32.partialorder %v202_v58, inf  ;;  %v214_v8 = vand.u32 2147483648, %v202_v58  ;;  %vm213_vm10 = vcmp.eq.f32.partialorder %v202_v58, 0.0 }
  0xa1   : > { %319 = vrsqrt.f32 %v203_v57  ;;  %vm223_vm11 = vcmp.eq.f32.partialorder %v203_v57, inf  ;;  %v226_v11 = vand.u32 2147483648, %v203_v57  ;;  %vm225_vm12 = vcmp.eq.f32.partialorder %v203_v57, 0.0 }
  0xa6   : > { %v318_v59 = vpop.eup %317 }
  0xa7   : > { %v320_v60 = vpop.eup %319  ;;  %v205_v61 = vmul.f32 %v318_v59, %v202_v58 }
  0xa8   : > { %v217_v62 = vmul.f32 %v320_v60, %v203_v57 }
  0xa9   : > { %v206_v63 = vmul.f32 %v318_v59, %v205_v61 }
  0xaa   : > { %v218_v0 = vmul.f32 %v320_v60, %v217_v62 }
  0xab   : > { %v207_v1 = vmul.f32 0.5, %v206_v63 }
  0xac   : > { %v219_v2 = vmul.f32 0.5, %v218_v0 }
  0xad   : > { %v208_v3 = vsub.f32 1.5, %v207_v1 }
  0xae   : > { %v220_v4 = vsub.f32 1.5, %v219_v2 }
  0xaf   : > { %v209_v5 = vmul.f32 %v318_v59, %v208_v3 }
  0xb0   : > { %v221_v6 = vmul.f32 %v320_v60, %v220_v4 }
  0xb1   : > { %v210_v7 = vmul.f32 %v209_v5, %v202_v58 }
  0xb2   : > { %v222_v9 = vmul.f32 %v221_v6, %v203_v57 }
  0xb3   : > { %v212_v10 = vsel %vm211_vm8, %v202_v58, %v210_v7 }
  0xb4   : > { %v215_v12 = vsel %vm213_vm10, %v214_v8, %v212_v10  ;;  %v224_v13 = vsel %vm223_vm11, %v203_v57, %v222_v9 }
  0xb5   : > { %v227_v14 = vsel %vm225_vm12, %v226_v11, %v224_v13  ;;  %v233_v15 = vsel %vm230_vm9, %v215_v12, 0.0 }
  0xb6   : > { %v234_v16 = vsel %vm230_vm9, %v227_v14, 0.0 }
  0xb7   : > { %v235_v17 = vmax.f32 %v233_v15, %v234_v16 }
  0xb9   : > { %236 = vmax.xlane.f32.xlu2 %v235_v17 }
 0x12c   : > { %v237_v18 = vpop.xlane.xlu2 %236 }
 0x12d   : > { %v238_v19 = vrot.slane %v237_v18, 4 }
 0x12f   : > { %v239_v20 = vmax.f32 %v237_v18, %v238_v19 }
 0x131   : > { %v240_v21 = vrot.slane %v239_v20, 2 }
 0x133   : > { %v241_v22 = vmax.f32 %v239_v20, %v240_v21 }
 0x135   : > { %v242_v23 = vrot.slane %v241_v22, 1 }
 0x137   : > { %v243_v24 = vmax.f32 %v241_v22, %v242_v23 }
 0x139   : > { %305 = vpush %v243_v24 }
 0x16a   : > { %s306_s17 = spop %305 }
 0x16b   : > { %v245_v25 = vstv %s306_s17 }
 0x16c   : > { %247 = vst.msk [vmem:[%s112_s16] sm:$0x1] %vm246_vm13, %v245_v25 }
 0x16d PF: > { %s11_s6 = sadd.s32 1, %s327_s6  }
 0x16e   : > { %p8_p4 = scmp.ge.s32.totalorder %s11_s6, 4  }
 0x170   :  { %10 = sbr.rel (!%p8_p4) target bundleno = 1 (0x1), region = 54 }

// kernel: etf_forward.3
= control target key start
LH: loop header
LB: loop body
LE: loop exit
PB: predicated region body
PF: predicated region fallthrough
CT: control target
= control target key end

     0   :  { %s2517_s0 = inlined_call_operand.<no memory space> [shape: f32[1,1], index: 0, kind: input, shape index: {}]   ;;  %s2518_s1 = inlined_call_operand.vmem [shape: f32[2,16,128], index: 1, kind: input, shape index: {}]   ;;  %s2519_s2 = inlined_call_operand.hbm [shape: f32[2,2,16,128], index: 2, kind: output, shape index: {}]  }
   0x1   :  { %7 = sst [smem:[#allocation2]] %s2517_s0 }
   0x2   :  { %8 = vsyncpa [#allocation4], 0 }
   0x3   :  { %10 = vsyncpa [#allocation4 + $0x1], 0  ;;  %s1574_s11 = smov 0   ;;  %s1576_s12 = smov 0  }
   0x4   :  { %s1578_s13 = smov 0   ;;  %s1580_s14 = smov 0  }
   0x5 LB: > { %s1595_s0 = sadd.s32 4294967295, %s1548_s14   ;;  %s1365_s15 = sadd.s32 4294967294, %s1548_s14   ;;  %s1548_s14 = sphi %s1580_s14, %s2529_s14   ;;  %s1544_s13 = sphi %s1578_s13, %s2528_s13   ;;  %s1540_s12 = sphi %s1576_s12, %s2527_s12   ;;  %s1536_s11 = sphi %s1574_s11, %s2526_s11  }
   0x6   : > { %s1599_s16 = sadd.s32 1, %s1548_s14   ;;  %s70_s17 = sadd.s32 1, %s1544_s13 }
   0x7   : > { %s67_s18 = ssub.s32 %s1548_s14, %s1599_s16  ;;  %p80_p0 = scmp.ne.s32.totalorder %s1544_s13, %s1540_s12 }
   0x8   : > { %p68_p1 = scmp.eq.s32.totalorder %s67_s18, 0  ;;  %p81_p2 = scmp.eq.s32.totalorder %s1595_s0, 1 }
   0x9   : > { %p86_p3 = scmp.ne.s32.totalorder %s1540_s12, %s1536_s11  ;;  %p87_p4 = scmp.eq.s32.totalorder %s1365_s15, 1 }
   0xa   : > { %s1610_s19 = scalar_select %p68_p1, %s1544_s13, %s70_s17  }
   0xb   : > { %p1612_p5 = por %p81_p2, %p80_p0  ;;  %p1616_p6 = por %p87_p4, %p86_p3 }
   0xc   : > { %p1368_p7 = scmp.ge.s32.totalorder %s1548_s14, 1  ;;  %p116_p8 = scmp.lt.s32.totalorder %s1548_s14, 3 }
   0xe   : > { %p117_p9 = pnand %p1368_p7, %p116_p8 }
   0xf   : > { %p138_p10 = scmp.lt.s32.totalorder (!%p117_p9), %s1595_s0, 1  ;;  %s1550_s27 = smov (!%p117_p9), 127  }
  0x10   : > { %120 = sbr.rel (%p117_p9) target bundleno = 927 (0x39f), region = 28  ;;  %s1551_s28 = smov (!%p117_p9), 1  }
  0x11   : > { %s1689_s29 = sld [smem:[#allocation2]] (!%p117_p9)  ;;  %s1552_s30 = smov (!%p117_p9), 2  }
  0x12   : > { %s1553_s3 = smov (!%p117_p9), 126   ;;  %s135_s4 = sand.u32 (!%p117_p9), 1, %s1540_s12  }
  0x13   : > { %s1369_s5 = sshll.u32 (!%p117_p9), %s135_s4, 5  ;;  %s1380_s6 = sshll.u32 (!%p117_p9), %s1595_s0, 5 }
  0x14   : > { %s137_s7 = scalar_lea.vmem (!%p117_p9), [#allocation3], %s1369_s5  ;;  %s1299_s10 = scalar_lea.hbm (!%p117_p9), %s2519_s2, %s1380_s6 }
  0x15   : > { %v145_v0 = vlaneseq  ;;  %s139_s22 = scalar_select %p138_p10, %s1595_s0, 1 }
  0x16   : > { %s1300_s15 = sshll.u32 %s137_s7, 4  ;;  %s1302_s17 = sshll.u32 %s1299_s10, 4  ;;  %s1301_s15 = int_to_ptr.vmem [resolvable:$true] %s1300_s15  ;;  %s1303_s17 = int_to_ptr.hbm [resolvable:$true] %s1302_s17 }
  0x17   : > { %v1624_v1 = vshrl.u32 %v145_v0, 7  ;;  %s1379_s23 = sshll.u32 %s139_s22, 4  ;;  %v1662_v25 = vand.u32 127, %v145_v0  ;;  %s1288_s0 = scalar_lea.sflag [#allocation4], %s135_s4 }
  0x18   : > { %s142_s26 = scalar_lea.vmem %s2518_s1, %s1379_s23  ;;  %s1500_s18 = sshra.s32 %s1303_s17, 4  ;;  %s1501_s18 = int_to_ptr.hbm [resolvable:$true] %s1500_s18 }
  0x19   : > { %v1627_v2 = vadd.s32 4294967295, %v1624_v1  ;;  %v1633_v3 = vadd.s32 8, %v1624_v1  ;;  %v143_v4 = vld [vmem:[%s142_s26] sm:$0xff]  ;;  %v144_v5 = vld [vmem:[%s142_s26 + $0x8] sm:$0xff]  ;;  %vm152_vm0 = vcmp.lt.s32.totalorder %v1624_v1, 1  ;;  %vm167_vm2 = vcmp.lt.s32.totalorder %v1624_v1, 7  ;;  %p1507_p0 = scmp.lt.s32.totalorder %s1501_s18, %s2519_s2 }
  0x1a   : > { %v150_v6 = vrot.slane %v143_v4, 7  ;;  %v151_v7 = vrot.slane %v144_v5, 7  ;;  %v165_v8 = vrot.slane %v143_v4, 1  ;;  %v166_v9 = vrot.slane %v144_v5, 1  ;;  %s1502_s22 = scalar_lea.hbm %s1501_s18, 32  ;;  %s1506_s25 = scalar_lea.hbm %s2519_s2, 64 }
  0x1b   : > { %vm157_vm1 = vcmp.ge.s32.totalorder %v1627_v2, 0  ;;  %v1639_v10 = vadd.s32 1, %v1633_v3  ;;  %v208_v11 = vmul.f32 2.0, %v143_v4  ;;  %v209_v18 = vmul.f32 2.0, %v144_v5  ;;  %p1503_p11 = scmp.ne.s32.totalorder %s1501_s18, %s1502_s22  ;;  %p1508_p1 = scmp.lt.s32.totalorder %s1506_s25, %s1502_s22 }
  0x1c   : > { %v154_v12 = vsel %vm152_vm0, %v151_v7, %v150_v6  ;;  %v168_v13 = vsel %vm167_vm2, %v165_v8, %v166_v9  ;;  %v169_v16 = vsel %vm167_vm2, %v166_v9, %v165_v8  ;;  %v153_v20 = vsel %vm152_vm0, %v150_v6, %v151_v7 }
  0x1d   : > { %v163_v14 = vsel %vm157_vm1, %v154_v12, 0.0  ;;  %vm175_vm3 = vcmp.lt.s32.totalorder %v1639_v10, 16  ;;  %v211_v23 = vadd.f32 %v209_v18, %v153_v20  ;;  %v186_v26 = vadd.s32 4294967295, %v1662_v25  ;;  %p1504_p12 = pnand %p1503_p11, %p1612_p5  ;;  %p1509_p2 = por %p1508_p1, %p1507_p0 }
  0x1e   : > { %v180_v15 = vsub.f32 %v168_v13, %v163_v14  ;;  %v210_v17 = vadd.f32 %v208_v11, %v163_v14  ;;  %v179_v21 = vsel %vm175_vm3, %v169_v16, 0.0  ;;  %v1670_v31 = vadd.s32 1, %v1662_v25 }
  0x1f   : > { %v181_v22 = vsub.f32 %v179_v21, %v153_v20  ;;  %v213_v24 = vadd.f32 %v211_v23, %v179_v21  ;;  %vm187_vm4 = vcmp.ge.s32.totalorder %v186_v26, 0  ;;  %vm188_vm5 = vcmp.lt.s32.totalorder %v186_v26, 16  ;;  %p1505_p13 = pneg %p1504_p12 }
  0x20   : > { %196 = vrot.lane.b32.xlu1 %v180_v15, %s1550_s27  ;;  %182 = vrot.lane.b32.xlu0 %v180_v15, %s1551_s28  ;;  %v212_v19 = vadd.f32 %v210_v17, %v168_v13  ;;  %vm1665_vm6 = vmand %vm187_vm4, %vm188_vm5  ;;  %v192_v32 = vmul.f32 2.0, %v180_v15  ;;  %vm202_vm7 = vcmp.lt.s32.totalorder %v1670_v31, 16  ;;  %v259_v7 = vstv %s1689_s29 }
  0x21   : > { %v193_v35 = vmul.f32 2.0, %v181_v22  ;;  %p1510_p3 = pnand %p1509_p2, %p1505_p13 }
  0x22   : > { %214 = vrot.lane.b32.xlu2 %v212_v19, %s1550_s27 }
  0x28   : > { %198 = vrot.lane.b32.xlu1 %v181_v22, %s1550_s27  ;;  %184 = vrot.lane.b32.xlu0 %v181_v22, %s1551_s28 }
  0x2a   : > { %216 = vrot.lane.b32.xlu2 %v213_v24, %s1550_s27 }
  0x30   : > { %222 = vrot.lane.b32.xlu1 %v213_v24, %s1551_s28  ;;  %220 = vrot.lane.b32.xlu0 %v212_v19, %s1551_s28 }
  0x7c   : > { %v215_v29 = vpop.permute.xlu2 %214 }
  0x7d   : > { %v218_v48 = vsel %vm202_vm7, %v215_v29, 0.0 }
  0x84   : > { %v217_v40 = vpop.permute.xlu2 %216 }
  0x85   : > { %v219_v43 = vsel %vm202_vm7, %v217_v40, 0.0 }
  0x92   : > { %v197_v27 = vpop.permute.xlu1 %196  ;;  %v183_v28 = vpop.permute.xlu0 %182 }
  0x93   : > { %v190_v36 = vsel %vm1665_vm6, %v183_v28, 0.0  ;;  %v204_v41 = vsel %vm202_vm7, %v197_v27, 0.0 }
  0x94   : > { %v194_v38 = vadd.f32 %v192_v32, %v190_v36 }
  0x96   : > { %v206_v44 = vadd.f32 %v204_v41, %v194_v38 }
  0x98   : > { %v228_v53 = vmul.f32 %v206_v44, %v206_v44 }
  0x9a   : > { %v199_v33 = vpop.permute.xlu1 %198  ;;  %v185_v34 = vpop.permute.xlu0 %184 }
  0x9b   : > { %v191_v37 = vsel %vm1665_vm6, %v185_v34, 0.0  ;;  %v205_v42 = vsel %vm202_vm7, %v199_v33, 0.0 }
  0x9c   : > { %v195_v39 = vadd.f32 %v193_v35, %v191_v37 }
  0x9e   : > { %v207_v45 = vadd.f32 %v205_v42, %v195_v39 }
  0xa0   : > { %v229_v54 = vmul.f32 %v207_v45, %v207_v45 }
  0xa2   : > { %v223_v46 = vpop.permute.xlu1 %222  ;;  %v221_v47 = vpop.permute.xlu0 %220 }
  0xa3   : > { %v225_v49 = vsel %vm1665_vm6, %v223_v46, 0.0  ;;  %v224_v50 = vsel %vm1665_vm6, %v221_v47, 0.0 }
  0xa4   : > { %v227_v51 = vsub.f32 %v219_v43, %v225_v49  ;;  %v226_v52 = vsub.f32 %v218_v48, %v224_v50 }
  0xa6   : > { %v231_v55 = vmul.f32 %v227_v51, %v227_v51  ;;  %v230_v56 = vmul.f32 %v226_v52, %v226_v52  ;;  %v287_v11 = vsub.f32 0.0, %v227_v51  ;;  %v286_v12 = vsub.f32 0.0, %v226_v52 }
  0xa8   : > { %v233_v57 = vadd.f32 %v231_v55, %v229_v54  ;;  %v232_v58 = vadd.f32 %v230_v56, %v228_v53 }
  0xaa   : > { %1426 = vrsqrt.f32 %v233_v57  ;;  %vm280_vm10 = vweird.f32 %v233_v57  ;;  %vm253_vm11 = vcmp.eq.f32.partialorder %v233_v57, inf  ;;  %vm255_vm12 = vcmp.eq.f32.partialorder %v233_v57, 0.0 }
  0xab   : > { %1428 = vrsqrt.f32 %v232_v58  ;;  %vm270_vm14 = vweird.f32 %v232_v58  ;;  %v256_v15 = vand.u32 2147483648, %v233_v57  ;;  %vm241_vm15 = vcmp.eq.f32.partialorder %v232_v58, inf }
  0xac   : > { %vm243_vm5 = vcmp.eq.f32.partialorder %v232_v58, 0.0  ;;  %v244_v34 = vand.u32 2147483648, %v232_v58 }
  0xb0   : > { %v1427_v59 = vpop.eup %1426 }
  0xb1   : > { %v1429_v60 = vpop.eup %1428  ;;  %v247_v61 = vmul.f32 %v1427_v59, %v233_v57  ;;  %vm281_vm8 = vweird.f32 %v1427_v59 }
  0xb2   : > { %v235_v62 = vmul.f32 %v1429_v60, %v232_v58  ;;  %vm271_vm9 = vweird.f32 %v1429_v60  ;;  %vm282_vm13 = vmor %vm280_vm10, %vm281_vm8  ;;  %vm302_vm8 = vcmp.lt.s32.totalorder %v1624_v1, 2 }
  0xb3   : > { %v248_v63 = vmul.f32 %v1427_v59, %v247_v61  ;;  %vm272_vm4 = vmor %vm270_vm14, %vm271_vm9  ;;  %vm353_vm9 = vcmp.lt.s32.totalorder %v1624_v1, 6 }
  0xb4   : > { %v236_v0 = vmul.f32 %v1429_v60, %v235_v62 }
  0xb5   : > { %v249_v4 = vmul.f32 0.5, %v248_v63 }
  0xb6   : > { %v237_v5 = vmul.f32 0.5, %v236_v0 }
  0xb7   : > { %v250_v6 = vsub.f32 1.5, %v249_v4  ;;  %v1764_v4 = vadd.s32 2, %v1633_v3 }
  0xb8   : > { %v238_v8 = vsub.f32 1.5, %v237_v5 }
  0xb9   : > { %v251_v9 = vmul.f32 %v1427_v59, %v250_v6 }
  0xba   : > { %v239_v13 = vmul.f32 %v1429_v60, %v238_v8 }
  0xbb   : > { %v252_v14 = vmul.f32 %v251_v9, %v233_v57  ;;  %v283_v16 = vsel %vm282_vm13, %v1427_v59, %v251_v9 }
  0xbc   : > { %v285_v17 = vsel %vm255_vm12, 1.0, %v283_v16  ;;  %v240_v18 = vmul.f32 %v239_v13, %v232_v58  ;;  %v273_v19 = vsel %vm272_vm4, %v1429_v60, %v239_v13 }
  0xbd   : > { %v254_v20 = vsel %vm253_vm11, %v233_v57, %v252_v14  ;;  %v1693_v21 = vmul.f32 %v287_v11, %v285_v17  ;;  %v1695_v22 = vmul.f32 %v285_v17, %v207_v45  ;;  %v284_v23 = vsel %vm243_vm5, 1.0, %v273_v19 }
  0xbe   : > { %v257_v24 = vsel %vm255_vm12, %v256_v15, %v254_v20  ;;  %v242_v26 = vsel %vm241_vm15, %v232_v58, %v240_v18  ;;  %v1699_v27 = vmul.f32 %v286_v12, %v284_v23  ;;  %v1707_v33 = vmul.f32 %v284_v23, %v206_v44 }
  0xbf   : > { %v1701_v28 = vmul.f32 %v259_v7, %v257_v24  ;;  %v431_v29 = vmul.f32 %v1693_v21, %v1693_v21  ;;  %v433_v32 = vmul.f32 %v1695_v22, %v1695_v22  ;;  %v443_v36 = vrot.slane %v1693_v21, 6 }
  0xc0   : > { %v447_v37 = vrot.slane %v1695_v22, 6  ;;  %v245_v38 = vsel %vm243_vm5, %v244_v34, %v242_v26  ;;  %v430_v40 = vmul.f32 %v1699_v27, %v1699_v27  ;;  %v432_v43 = vmul.f32 %v1707_v33, %v1707_v33 }
  0xc1   : > { %v435_v35 = vadd.f32 %v433_v32, %v431_v29  ;;  %372 = vrot.lane.b32.xlu0 %v1701_v28, %s1552_s30  ;;  %v301_v39 = vrot.slane %v1701_v28, 6  ;;  %v1718_v41 = vmul.f32 %v259_v7, %v245_v38  ;;  %v316_v42 = vrot.slane %v1701_v28, 7 }
  0xc2   : > { %v442_v44 = vrot.slane %v1699_v27, 6  ;;  %v1725_v45 = vadd.s32 4294967294, %v1624_v1  ;;  %v467_v46 = vrot.slane %v1693_v21, 7  ;;  %v471_v47 = vrot.slane %v1695_v22, 7 }
  0xc3   : > { %v446_v48 = vrot.slane %v1707_v33, 6  ;;  %v437_v49 = vmul.f32 0.5, %v435_v35  ;;  %v491_v50 = vrot.slane %v1693_v21, 1  ;;  %v300_v51 = vrot.slane %v1718_v41, 6  ;;  %384 = vrot.lane.b32.xlu1 %v1718_v41, %s1551_s28  ;;  %370 = vrot.lane.b32.xlu2 %v1718_v41, %s1552_s30 }
  0xc4   : > { %v315_v52 = vrot.slane %v1718_v41, 7  ;;  %v434_v53 = vadd.f32 %v432_v43, %v430_v40  ;;  %v1739_v54 = vsel %vm302_vm8, %v443_v36, %v442_v44  ;;  %v466_v56 = vrot.slane %v1699_v27, 7 }
  0xc5   : > { %v1747_v55 = vsel %vm302_vm8, %v447_v37, %v446_v48  ;;  %v304_v57 = vsel %vm302_vm8, %v301_v39, %v300_v51  ;;  %v470_v59 = vrot.slane %v1707_v33, 7  ;;  %v490_v60 = vrot.slane %v1699_v27, 1 }
  0xc6   : > { %v318_v58 = vsel %vm152_vm0, %v316_v42, %v315_v52  ;;  %v305_v61 = vsub.f32 %v304_v57, %v1718_v41  ;;  %v436_v63 = vmul.f32 0.5, %v434_v53  ;;  %v1760_v0 = vsel %vm302_vm8, %v442_v44, %v443_v36 }
  0xc7   : > { %v319_v62 = vsub.f32 %v318_v58, %v1718_v41  ;;  %v495_v5 = vrot.slane %v1695_v22, 1  ;;  %v450_v6 = vmul.f32 %v1739_v54, %v1699_v27  ;;  %v452_v7 = vmul.f32 %v1747_v55, %v1707_v33 }
  0xc8   : > { %vm294_vm10 = vcmp.ge.s32.totalorder %v1725_v45, 0  ;;  %v1775_v8 = vmul.f32 %v437_v49, %v1693_v21  ;;  %v515_v9 = vrot.slane %v1693_v21, 2  ;;  %1430 = vtanh.f32 %v305_v61 }
  0xc9   : > { %398 = vrot.lane.b32.xlu0 %v1718_v41, %s1550_s27  ;;  %v1780_v3 = vsel %vm152_vm0, %v467_v46, %v466_v56  ;;  %v1783_v11 = vmul.f32 %v437_v49, %v1695_v22  ;;  %1432 = vtanh.f32 %v319_v62  ;;  %v1787_v12 = vmul.f32 %v1760_v0, %v1693_v21 }
  0xca   : > { %v1791_v13 = vsel %vm152_vm0, %v466_v56, %v467_v46  ;;  %v1794_v14 = vmul.f32 %v436_v63, %v1699_v27  ;;  %v1797_v15 = vmul.f32 %v436_v63, %v1707_v33  ;;  %v1803_v16 = vsel %vm152_vm0, %v471_v47, %v470_v59 }
  0xcb   : > { %v1807_v17 = vsel %vm167_vm2, %v490_v60, %v491_v50  ;;  %v519_v18 = vrot.slane %v1695_v22, 2  ;;  %v454_v19 = vadd.f32 %v452_v7, %v450_v6  ;;  %v474_v20 = vmul.f32 %v1780_v3, %v1699_v27  ;;  %400 = vrot.lane.b32.xlu1 %v1701_v28, %s1550_s27  ;;  %386 = vrot.lane.b32.xlu2 %v1701_v28, %s1551_s28 }
  0xcc   : > { %v303_v23 = vsel %vm302_vm8, %v300_v51, %v301_v39  ;;  %v475_v24 = vmul.f32 %v1791_v13, %v1693_v21  ;;  %v317_v29 = vsel %vm152_vm0, %v315_v52, %v316_v42  ;;  %v329_v32 = vrot.slane %v1718_v41, 1 }
  0xcd   : > { %v306_v26 = vsub.f32 %v303_v23, %v1701_v28  ;;  %v476_v34 = vmul.f32 %v1803_v16, %v1707_v33  ;;  %v1828_v35 = vsel %vm167_vm2, %v491_v50, %v490_v60  ;;  %v320_v36 = vsub.f32 %v317_v29, %v1701_v28 }
  0xce   : > { %v330_v38 = vrot.slane %v1701_v28, 1  ;;  %v1431_v39 = vpop.eup %1430  ;;  %v494_v40 = vrot.slane %v1707_v33, 1  ;;  %v351_v43 = vrot.slane %v1718_v41, 2  ;;  %v352_v42 = vrot.slane %v1701_v28, 2 }
  0xcf   : > { %1434 = vtanh.f32 %v306_v26  ;;  %v1433_v44 = vpop.eup %1432  ;;  %v309_v46 = vadd.f32 1.0, %v1431_v39  ;;  %v514_v49 = vrot.slane %v1699_v27, 2  ;;  %v448_v56 = vsel %vm302_vm8, %v446_v48, %v447_v37 }
  0xd0   : > { %1436 = vtanh.f32 %v320_v36  ;;  %v332_v50 = vsel %vm167_vm2, %v330_v38, %v329_v32  ;;  %v323_v51 = vadd.f32 1.0, %v1433_v44  ;;  %v355_v53 = vsel %vm353_vm9, %v352_v42, %v351_v43 }
  0xd1   : > { %418 = vrot.lane.b32.xlu0 %v1701_v28, %s1553_s3  ;;  %v334_v52 = vsub.f32 %v332_v50, %v1701_v28  ;;  %v311_v57 = vmul.f32 0.5, %v309_v46  ;;  %v518_v58 = vrot.slane %v1707_v33, 2  ;;  %v357_v60 = vsub.f32 %v355_v53, %v1701_v28 }
  0xd2   : > { %v472_v61 = vsel %vm152_vm0, %v470_v59, %v471_v47  ;;  %v325_v62 = vmul.f32 0.5, %v323_v51  ;;  %v453_v63 = vmul.f32 %v448_v56, %v1695_v22  ;;  %v497_v6 = vsel %vm167_vm2, %v495_v5, %v494_v40 }
  0xd3   : > { %1438 = vtanh.f32 %v334_v52  ;;  %vm348_vm11 = vcmp.lt.s32.totalorder %v1764_v4, 16  ;;  %v1863_v37 = vsel %vm294_vm10, %v311_v57, 0.0  ;;  %v1867_v48 = vmul.f32 %v1807_v17, %v1699_v27  ;;  %416 = vrot.lane.b32.xlu2 %v1718_v41, %s1553_s3 }
  0xd4   : > { %1440 = vtanh.f32 %v357_v60  ;;  %v477_v47 = vmul.f32 %v472_v61, %v1695_v22  ;;  %v478_v7 = vadd.f32 %v476_v34, %v474_v20  ;;  %v1876_v23 = vsel %vm167_vm2, %v494_v40, %v495_v5 }
  0xd5   : > { %v1435_v59 = vpop.eup %1434  ;;  %v499_v45 = vmul.f32 %v1828_v35, %v1693_v21  ;;  %v517_v26 = vsel %vm353_vm9, %v515_v9, %v514_v49  ;;  %v1888_v20 = vsel %vm353_vm9, %v518_v58, %v519_v18  ;;  %v501_v36 = vmul.f32 %v497_v6, %v1695_v22 }
  0xd6   : > { %v1437_v29 = vpop.eup %1436  ;;  %v310_v34 = vadd.f32 1.0, %v1435_v59  ;;  %v521_v5 = vsel %vm353_vm9, %v519_v18, %v518_v58  ;;  %v1895_v39 = vsel %vm157_vm1, %v325_v62, 0.0  ;;  %v456_v40 = vmul.f32 %v454_v19, %v1863_v37 }
  0xd7   : > { %v324_v44 = vadd.f32 1.0, %v1437_v29  ;;  %v455_v46 = vadd.f32 %v453_v63, %v1787_v12  ;;  %v479_v51 = vadd.f32 %v477_v47, %v475_v24  ;;  %v523_v52 = vmul.f32 %v517_v26, %v1693_v21 }
  0xd8   : > { %v1899_v50 = vmul.f32 0.5, %v310_v34  ;;  %v331_v53 = vsel %vm167_vm2, %v329_v32, %v330_v38  ;;  %v525_v2 = vmul.f32 %v521_v5, %v1695_v22  ;;  %v354_v19 = vsel %vm353_vm9, %v351_v43, %v352_v42 }
  0xd9   : > { %v1439_v57 = vpop.eup %1438  ;;  %v1904_v60 = vmul.f32 0.5, %v324_v44  ;;  %v333_v18 = vsub.f32 %v331_v53, %v1718_v41  ;;  %v503_v24 = vadd.f32 %v501_v36, %v499_v45  ;;  %v356_v63 = vsub.f32 %v354_v19, %v1718_v41 }
  0xda   : > { %v1441_v58 = vpop.eup %1440  ;;  %v338_v12 = vadd.f32 1.0, %v1439_v57  ;;  %v457_v62 = vmul.f32 %v455_v46, %v1899_v50  ;;  %v458_v47 = vmul.f32 %v456_v40, %v1739_v54  ;;  %v462_v43 = vmul.f32 %v456_v40, %v1747_v55 }
  0xdb   : > { %v361_v32 = vadd.f32 1.0, %v1441_v58  ;;  %v481_v38 = vmul.f32 %v479_v51, %v1904_v60  ;;  %1442 = vtanh.f32 %v333_v18  ;;  %v527_v44 = vadd.f32 %v525_v2, %v523_v52 }
  0xdc   : > { %v340_v59 = vmul.f32 0.5, %v338_v12  ;;  %v459_v22 = vmul.f32 %v457_v62, %v1760_v0  ;;  %v463_v29 = vmul.f32 %v457_v62, %v448_v56  ;;  %1444 = vtanh.f32 %v356_v63 }
  0xdd   : > { %v363_v42 = vmul.f32 0.5, %v361_v32  ;;  %v483_v34 = vmul.f32 %v481_v38, %v1791_v13  ;;  %v487_v46 = vmul.f32 %v481_v38, %v472_v61  ;;  %v500_v0 = vmul.f32 %v1876_v23, %v1707_v33 }
  0xde   : > { %v1919_v45 = vsel %vm175_vm3, %v340_v59, 0.0  ;;  %v461_v54 = vadd.f32 %v459_v22, %v1775_v8  ;;  %v465_v36 = vadd.f32 %v463_v29, %v1783_v11  ;;  %v516_v10 = vsel %vm353_vm9, %v514_v49, %v515_v9 }
  0xdf   : > { %v1927_v56 = vsel %vm348_vm11, %v363_v42, 0.0  ;;  %v505_v55 = vmul.f32 %v503_v24, %v1919_v45  ;;  %v480_v8 = vmul.f32 %v478_v7, %v1895_v39  ;;  %v524_v4 = vmul.f32 %v1888_v20, %v1707_v33 }
  0xe0   : > { %v485_v11 = vadd.f32 %v483_v34, %v461_v54  ;;  %v489_v13 = vadd.f32 %v487_v46, %v465_v36  ;;  %v529_v61 = vmul.f32 %v527_v44, %v1927_v56  ;;  %v522_v21 = vmul.f32 %v516_v10, %v1699_v27 }
  0xe1   : > { %v1443_v40 = vpop.eup %1442  ;;  %v507_v51 = vmul.f32 %v505_v55, %v1828_v35  ;;  %v511_v52 = vmul.f32 %v505_v55, %v497_v6  ;;  %v464_v57 = vadd.f32 %v462_v43, %v1797_v15  ;;  %v460_v49 = vadd.f32 %v458_v47, %v1794_v14 }
  0xe2   : > { %v1445_v53 = vpop.eup %1444  ;;  %v531_v2 = vmul.f32 %v529_v61, %v517_v26  ;;  %v337_v9 = vadd.f32 1.0, %v1443_v40  ;;  %v535_v19 = vmul.f32 %v529_v61, %v521_v5  ;;  %v486_v12 = vmul.f32 %v480_v8, %v1803_v16 }
  0xe3   : > { %v509_v7 = vadd.f32 %v507_v51, %v485_v11  ;;  %v513_v18 = vadd.f32 %v511_v52, %v489_v13  ;;  %v360_v58 = vadd.f32 1.0, %v1445_v53  ;;  %v502_v33 = vadd.f32 %v500_v0, %v1867_v48 }
  0xe4   : > { %v1946_v62 = vmul.f32 0.5, %v337_v9  ;;  %v482_v35 = vmul.f32 %v480_v8, %v1780_v3  ;;  %v526_v15 = vadd.f32 %v524_v4, %v522_v21  ;;  %v488_v26 = vadd.f32 %v486_v12, %v464_v57 }
  0xe5   : > { %v533_v27 = vadd.f32 %v531_v2, %v509_v7  ;;  %v537_v6 = vadd.f32 %v535_v19, %v513_v18  ;;  %v1949_v24 = vmul.f32 0.5, %v360_v58 }
  0xe6   : > { %v484_v63 = vadd.f32 %v482_v35, %v460_v49  ;;  %v504_v14 = vmul.f32 %v502_v33, %v1946_v62 }
  0xe7   : > { %v539_v47 = vmul.f32 %v533_v27, %v533_v27  ;;  %v541_v5 = vmul.f32 %v537_v6, %v537_v6  ;;  %v528_v32 = vmul.f32 %v526_v15, %v1949_v24 }
  0xe8   : > { %v506_v16 = vmul.f32 %v504_v14, %v1807_v17  ;;  %v510_v48 = vmul.f32 %v504_v14, %v1876_v23 }
  0xe9   : > { %v543_v38 = vadd.f32 %v541_v5, %v539_v47  ;;  %v530_v22 = vmul.f32 %v528_v32, %v516_v10  ;;  %v534_v29 = vmul.f32 %v528_v32, %v1888_v20 }
  0xea   : > { %v508_v59 = vadd.f32 %v506_v16, %v484_v63  ;;  %v512_v3 = vadd.f32 %v510_v48, %v488_v26 }
  0xeb   : > { %1446 = vrsqrt.f32 %v543_v38  ;;  %vm562_vm3 = vweird.f32 %v543_v38  ;;  %vm545_vm13 = vcmp.eq.f32.partialorder %v543_v38, 0.0 }
  0xec   : > { %v532_v43 = vadd.f32 %v530_v22, %v508_v59  ;;  %v536_v42 = vadd.f32 %v534_v29, %v512_v3  ;;  %v366_v59 = vadd.s32 4294967294, %v1662_v25 }
  0xee   : > { %v538_v34 = vmul.f32 %v532_v43, %v532_v43  ;;  %v540_v44 = vmul.f32 %v536_v42, %v536_v42  ;;  %vm367_vm10 = vcmp.ge.s32.totalorder %v366_v59, 0  ;;  %vm368_vm11 = vcmp.lt.s32.totalorder %v366_v59, 16 }
  0xf0   : > { %v542_v54 = vadd.f32 %v540_v44, %v538_v34 }
  0xf1   : > { %v1447_v36 = vpop.eup %1446 }
  0xf2   : > { %v557_v46 = vmul.f32 %v1447_v36, %v543_v38  ;;  %1448 = vrsqrt.f32 %v542_v54  ;;  %vm563_vm1 = vweird.f32 %v1447_v36  ;;  %vm552_vm15 = vweird.f32 %v542_v54 }
  0xf3   : > { %vm564_vm12 = vmor %vm562_vm3, %vm563_vm1  ;;  %vm544_vm5 = vcmp.eq.f32.partialorder %v542_v54, 0.0 }
  0xf4   : > { %v558_v0 = vmul.f32 %v1447_v36, %v557_v46  ;;  %vm2031_vm1 = vmand %vm367_vm10, %vm368_vm11 }
  0xf6   : > { %v559_v55 = vmul.f32 0.5, %v558_v0 }
  0xf8   : > { %v1449_v17 = vpop.eup %1448  ;;  %v560_v8 = vsub.f32 1.5, %v559_v55 }
  0xf9   : > { %v547_v23 = vmul.f32 %v1449_v17, %v542_v54  ;;  %vm553_vm14 = vweird.f32 %v1449_v17 }
  0xfa   : > { %v561_v11 = vmul.f32 %v1447_v36, %v560_v8  ;;  %vm554_vm4 = vmor %vm552_vm15, %vm553_vm14 }
  0xfb   : > { %v548_v10 = vmul.f32 %v1449_v17, %v547_v23 }
  0xfc   : > { %v565_v20 = vsel %vm564_vm12, %v1447_v36, %v561_v11 }
  0xfd   : > { %v567_v13 = vsel %vm545_vm13, 1.0, %v565_v20  ;;  %v549_v61 = vmul.f32 0.5, %v548_v10 }
  0xfe   : > { %v1956_v40 = vmul.f32 %v567_v13, %v537_v6  ;;  %v1958_v4 = vmul.f32 %v567_v13, %v533_v27 }
  0xff   : > { %v550_v51 = vsub.f32 1.5, %v549_v61 }
 0x100   : > { %590 = vrot.lane.b32.xlu1 %v1956_v40, %s1552_s30  ;;  %610 = vrot.lane.b32.xlu0 %v1958_v4, %s1551_s28  ;;  %v575_v55 = vmul.f32 %v1956_v40, %v1956_v40 }
 0x101   : > { %586 = vrot.lane.b32.xlu2 %v1958_v4, %s1552_s30  ;;  %v551_v52 = vmul.f32 %v1449_v17, %v550_v51  ;;  %v2036_v51 = vadd.s32 2, %v1662_v25 }
 0x103   : > { %v555_v21 = vsel %vm554_vm4, %v1449_v17, %v551_v52  ;;  %vm414_vm3 = vcmp.lt.s32.totalorder %v2036_v51, 16 }
 0x104   : > { %v566_v53 = vsel %vm544_vm5, 1.0, %v555_v21 }
 0x105   : > { %v1972_v57 = vmul.f32 %v566_v53, %v532_v43  ;;  %v1974_v2 = vmul.f32 %v566_v53, %v536_v42 }
 0x107   : > { %v572_v16 = vmul.f32 %v1972_v57, %v1972_v57  ;;  %v574_v48 = vmul.f32 %v1974_v2, %v1974_v2 }
 0x108   : > { %634 = vrot.lane.b32.xlu1 %v1958_v4, %s1550_s27  ;;  %638 = vrot.lane.b32.xlu0 %v1956_v40, %s1550_s27 }
 0x109   : > { %614 = vrot.lane.b32.xlu2 %v1956_v40, %s1551_s28  ;;  %v576_v34 = vadd.f32 %v574_v48, %v572_v16 }
 0x10b   : > { %v578_v23 = vmul.f32 0.5, %v576_v34 }
 0x110   : > { %584 = vrot.lane.b32.xlu1 %v1972_v57, %s1552_s30  ;;  %588 = vrot.lane.b32.xlu0 %v1974_v2, %s1552_s30 }
 0x111   : > { %608 = vrot.lane.b32.xlu2 %v1972_v57, %s1551_s28 }
 0x118   : > { %612 = vrot.lane.b32.xlu1 %v1974_v2, %s1551_s28  ;;  %632 = vrot.lane.b32.xlu0 %v1972_v57, %s1550_s27 }
 0x119   : > { %636 = vrot.lane.b32.xlu2 %v1974_v2, %s1550_s27 }
 0x11d   : > { %v371_v9 = vpop.permute.xlu2 %370 }
 0x11e   : > { %v374_v15 = vsub.f32 %v371_v9, %v1718_v41 }
 0x120   : > { %656 = vrot.lane.b32.xlu1 %v1972_v57, %s1553_s3  ;;  %660 = vrot.lane.b32.xlu0 %v1974_v2, %s1553_s3  ;;  %1450 = vtanh.f32 %v374_v15 }
 0x121   : > { %658 = vrot.lane.b32.xlu2 %v1958_v4, %s1553_s3 }
 0x125   : > { %v387_v7 = vpop.permute.xlu2 %386 }
 0x126   : > { %v1451_v38 = vpop.eup %1450  ;;  %v389_v3 = vsub.f32 %v387_v7, %v1701_v28 }
 0x127   : > { %v378_v43 = vadd.f32 1.0, %v1451_v38 }
 0x128   : > { %662 = vrot.lane.b32.xlu1 %v1956_v40, %s1553_s3 }
 0x129   : > { %v380_v8 = vmul.f32 0.5, %v378_v43 }
 0x12b   : > { %v2040_v9 = vsel %vm2031_vm1, %v380_v8, 0.0 }
 0x12d   : > { %v417_v58 = vpop.permute.xlu2 %416 }
 0x12e   : > { %v420_v22 = vsub.f32 %v417_v58, %v1718_v41 }
 0x133   : > { %v373_v49 = vpop.permute.xlu0 %372 }
 0x134   : > { %v375_v5 = vsub.f32 %v373_v49, %v1701_v28 }
 0x135   : > { %v385_v18 = vpop.permute.xlu1 %384 }
 0x136   : > { %v388_v63 = vsub.f32 %v385_v18, %v1718_v41 }
 0x138   : > { %1452 = vtanh.f32 %v388_v63  ;;  %v580_v63 = vmul.f32 %v578_v23, %v1972_v57 }
 0x139   : > { %1454 = vtanh.f32 %v375_v5 }
 0x13b   : > { %v399_v19 = vpop.permute.xlu0 %398 }
 0x13c   : > { %v402_v32 = vsub.f32 %v399_v19, %v1718_v41  ;;  %v573_v41 = vmul.f32 %v1958_v4, %v1958_v4  ;;  %v582_v19 = vmul.f32 %v578_v23, %v1974_v2 }
 0x13d   : > { %v401_v12 = vpop.permute.xlu1 %400 }
 0x13e   : > { %1456 = vtanh.f32 %v402_v32  ;;  %v403_v42 = vsub.f32 %v401_v12, %v1701_v28  ;;  %v1453_v36 = vpop.eup %1452  ;;  %v577_v21 = vadd.f32 %v575_v55, %v573_v41 }
 0x13f   : > { %1458 = vtanh.f32 %v389_v3  ;;  %v1455_v17 = vpop.eup %1454  ;;  %v392_v20 = vadd.f32 1.0, %v1453_v36 }
 0x140   : > { %1460 = vtanh.f32 %v420_v22  ;;  %v379_v52 = vadd.f32 1.0, %v1455_v17 }
 0x141   : > { %1462 = vtanh.f32 %v403_v42  ;;  %v394_v58 = vmul.f32 0.5, %v392_v20 }
 0x142   : > { %v381_v59 = vmul.f32 0.5, %v379_v52 }
 0x143   : > { %v1996_v33 = vpop.permute.xlu0 %418  ;;  %v2059_v34 = vsel %vm1665_vm6, %v394_v58, 0.0 }
 0x144   : > { %v1457_v11 = vpop.eup %1456  ;;  %v421_v7 = vsub.f32 %v1996_v33, %v1701_v28 }
 0x145   : > { %v1459_v61 = vpop.eup %1458  ;;  %v406_v49 = vadd.f32 1.0, %v1457_v11 }
 0x146   : > { %v1461_v53 = vpop.eup %1460  ;;  %v393_v16 = vadd.f32 1.0, %v1459_v61  ;;  %1464 = vtanh.f32 %v421_v7  ;;  %v2070_v61 = vsel %vm2031_vm1, %v381_v59, 0.0 }
 0x147   : > { %v1463_v32 = vpop.eup %1462  ;;  %v424_v38 = vadd.f32 1.0, %v1461_v53  ;;  %v408_v22 = vmul.f32 0.5, %v406_v49 }
 0x148   : > { %v407_v36 = vadd.f32 1.0, %v1463_v32  ;;  %v395_v41 = vmul.f32 0.5, %v393_v16 }
 0x149   : > { %v426_v23 = vmul.f32 0.5, %v424_v38 }
 0x14a   : > { %v409_v53 = vmul.f32 0.5, %v407_v36 }
 0x14c   : > { %v1465_v32 = vpop.eup %1464 }
 0x15b   : > { %v1998_v35 = vpop.permute.xlu2 %586 }
 0x15c   : > { %v593_v3 = vmul.f32 %v1998_v35, %v1958_v4 }
 0x163   : > { %v2005_v26 = vpop.permute.xlu2 %614 }
 0x164   : > { %v619_v49 = vmul.f32 %v2005_v26, %v1956_v40 }
 0x16b   : > { %v2021_v29 = vpop.permute.xlu2 %608 }
 0x16c   : > { %v616_v48 = vmul.f32 %v2021_v29, %v1972_v57 }
 0x172   : > { %v2000_v27 = vpop.permute.xlu1 %590  ;;  %v2002_v6 = vpop.permute.xlu0 %610 }
 0x173   : > { %v637_v18 = vpop.permute.xlu2 %636  ;;  %v595_v12 = vmul.f32 %v2000_v27, %v1956_v40  ;;  %v617_v11 = vmul.f32 %v2002_v6, %v1958_v4 }
 0x174   : > { %v642_v43 = vmul.f32 %v637_v18, %v1974_v2 }
 0x17a   : > { %v2008_v14 = vpop.permute.xlu1 %634  ;;  %v2010_v47 = vpop.permute.xlu0 %638 }
 0x17b   : > { %v641_v20 = vmul.f32 %v2008_v14, %v1958_v4 }
 0x182   : > { %v585_v44 = vpop.permute.xlu1 %584  ;;  %v589_v54 = vpop.permute.xlu0 %588 }
 0x183   : > { %v592_v46 = vmul.f32 %v585_v44, %v1972_v57  ;;  %v594_v0 = vmul.f32 %v589_v54, %v1974_v2 }
 0x185   : > { %v596_v13 = vadd.f32 %v594_v0, %v592_v46  ;;  %v597_v46 = vadd.f32 %v595_v12, %v593_v3 }
 0x187   : > { %v598_v25 = vmul.f32 %v596_v13, %v2040_v9  ;;  %v643_v13 = vmul.f32 %v2010_v47, %v1956_v40  ;;  %v599_v7 = vmul.f32 %v597_v46, %v2070_v61 }
 0x189   : > { %v604_v0 = vmul.f32 %v598_v25, %v589_v54  ;;  %v600_v55 = vmul.f32 %v598_v25, %v585_v44  ;;  %v2074_v44 = vsel %vm202_vm7, %v408_v22, 0.0  ;;  %v2085_v22 = vsel %vm1665_vm6, %v395_v41, 0.0  ;;  %v659_v41 = vpop.permute.xlu2 %658 }
 0x18a   : > { %v613_v15 = vpop.permute.xlu1 %612  ;;  %v633_v5 = vpop.permute.xlu0 %632  ;;  %v605_v36 = vmul.f32 %v599_v7, %v2000_v27 }
 0x18b   : > { %v618_v28 = vmul.f32 %v613_v15, %v1974_v2  ;;  %v640_v33 = vmul.f32 %v633_v5, %v1972_v57  ;;  %v606_v58 = vadd.f32 %v604_v0, %v582_v19  ;;  %v602_v10 = vadd.f32 %v600_v55, %v580_v63 }
 0x18c   : > { %v2089_v19 = vsel %vm414_vm3, %v426_v23, 0.0  ;;  %v425_v63 = vadd.f32 1.0, %v1465_v32 }
 0x18d   : > { %v620_v42 = vadd.f32 %v618_v28, %v616_v48  ;;  %v644_v8 = vadd.f32 %v642_v43, %v640_v33  ;;  %v579_v33 = vmul.f32 0.5, %v577_v21  ;;  %v601_v43 = vmul.f32 %v599_v7, %v1998_v35 }
 0x18e   : > { %v427_v31 = vmul.f32 0.5, %v425_v63 }
 0x18f   : > { %v622_v17 = vmul.f32 %v620_v42, %v2059_v34  ;;  %v646_v16 = vmul.f32 %v644_v8, %v2074_v44  ;;  %v581_v30 = vmul.f32 %v579_v33, %v1958_v4  ;;  %v583_v23 = vmul.f32 %v579_v33, %v1956_v40 }
 0x191   : > { %v624_v54 = vmul.f32 %v622_v17, %v2021_v29  ;;  %v628_v52 = vmul.f32 %v622_v17, %v613_v15  ;;  %v621_v29 = vadd.f32 %v619_v49, %v617_v11  ;;  %v645_v15 = vadd.f32 %v643_v13, %v641_v20 }
 0x192   : > { %v657_v12 = vpop.permute.xlu1 %656  ;;  %v661_v25 = vpop.permute.xlu0 %660  ;;  %v652_v21 = vmul.f32 %v646_v16, %v637_v18  ;;  %v665_v11 = vmul.f32 %v659_v41, %v1958_v4 }
 0x193   : > { %v664_v48 = vmul.f32 %v657_v12, %v1972_v57  ;;  %v666_v28 = vmul.f32 %v661_v25, %v1974_v2  ;;  %v630_v38 = vadd.f32 %v628_v52, %v606_v58  ;;  %v626_v59 = vadd.f32 %v624_v54, %v602_v10 }
 0x194   : > { %v2094_v57 = vsel %vm202_vm7, %v409_v53, 0.0  ;;  %v648_v2 = vmul.f32 %v646_v16, %v633_v5  ;;  %v623_v46 = vmul.f32 %v621_v29, %v2085_v22  ;;  %v603_v5 = vadd.f32 %v601_v43, %v581_v30 }
 0x195   : > { %v668_v3 = vadd.f32 %v666_v28, %v664_v48  ;;  %v647_v0 = vmul.f32 %v645_v15, %v2094_v57  ;;  %v654_v17 = vadd.f32 %v652_v21, %v630_v38  ;;  %v607_v54 = vadd.f32 %v605_v36, %v583_v23 }
 0x196   : > { %v650_v55 = vadd.f32 %v648_v2, %v626_v59  ;;  %v625_v52 = vmul.f32 %v623_v46, %v2002_v6 }
 0x197   : > { %v670_v42 = vmul.f32 %v668_v3, %v2089_v19  ;;  %v649_v53 = vmul.f32 %v647_v0, %v2008_v14  ;;  %v653_v4 = vmul.f32 %v647_v0, %v2010_v47 }
 0x198   : > { %v627_v32 = vadd.f32 %v625_v52, %v603_v5 }
 0x199   : > { %v672_v35 = vmul.f32 %v670_v42, %v657_v12  ;;  %v676_v8 = vmul.f32 %v670_v42, %v661_v25  ;;  %v2108_v12 = vsel %vm414_vm3, %v427_v31, 0.0  ;;  %v629_v25 = vmul.f32 %v623_v46, %v2005_v26 }
 0x19a   : > { %v663_v18 = vpop.permute.xlu1 %662  ;;  %v651_v48 = vadd.f32 %v649_v53, %v627_v32 }
 0x19b   : > { %v674_v20 = vadd.f32 %v672_v35, %v650_v55  ;;  %v678_v27 = vadd.f32 %v676_v8, %v654_v17  ;;  %v667_v13 = vmul.f32 %v663_v18, %v1956_v40  ;;  %v631_v16 = vadd.f32 %v629_v25, %v607_v54 }
 0x19d   : > { %v680_v49 = vmul.f32 %v674_v20, %v674_v20  ;;  %v682_v7 = vmul.f32 %v678_v27, %v678_v27  ;;  %v669_v58 = vadd.f32 %v667_v13, %v665_v11  ;;  %v655_v14 = vadd.f32 %v653_v4, %v631_v16 }
 0x19f   : > { %v684_v10 = vadd.f32 %v682_v7, %v680_v49  ;;  %v671_v40 = vmul.f32 %v669_v58, %v2108_v12 }
 0x1a1   : > { %1466 = vrsqrt.f32 %v684_v10  ;;  %v673_v6 = vmul.f32 %v671_v40, %v659_v41  ;;  %v677_v28 = vmul.f32 %v671_v40, %v663_v18  ;;  %vm694_vm7 = vweird.f32 %v684_v10 }
 0x1a2   : > { %vm686_vm13 = vcmp.eq.f32.partialorder %v684_v10, 0.0 }
 0x1a3   : > { %v675_v33 = vadd.f32 %v673_v6, %v651_v48  ;;  %v679_v29 = vadd.f32 %v677_v28, %v655_v14 }
 0x1a5   : > { %v681_v15 = vmul.f32 %v675_v33, %v675_v33  ;;  %v683_v51 = vmul.f32 %v679_v29, %v679_v29 }
 0x1a7   : > { %v1467_v38 = vpop.eup %1466  ;;  %v685_v3 = vadd.f32 %v683_v51, %v681_v15 }
 0x1a8   : > { %v689_v59 = vmul.f32 %v1467_v38, %v684_v10  ;;  %vm695_vm6 = vweird.f32 %v1467_v38 }
 0x1a9   : > { %1468 = vrsqrt.f32 %v685_v3  ;;  %vm696_vm12 = vmor %vm694_vm7, %vm695_vm6  ;;  %vm704_vm15 = vweird.f32 %v685_v3  ;;  %vm687_vm5 = vcmp.eq.f32.partialorder %v685_v3, 0.0 }
 0x1aa   : > { %v690_v26 = vmul.f32 %v1467_v38, %v689_v59 }
 0x1ac   : > { %v691_v47 = vmul.f32 0.5, %v690_v26 }
 0x1ae   : > { %v692_v63 = vsub.f32 1.5, %v691_v47 }
 0x1af   : > { %v1469_v43 = vpop.eup %1468 }
 0x1b0   : > { %v693_v2 = vmul.f32 %v1467_v38, %v692_v63  ;;  %v699_v21 = vmul.f32 %v1469_v43, %v685_v3  ;;  %vm705_vm14 = vweird.f32 %v1469_v43 }
 0x1b1   : > { %vm706_vm4 = vmor %vm704_vm15, %vm705_vm14 }
 0x1b2   : > { %v697_v42 = vsel %vm696_vm12, %v1467_v38, %v693_v2  ;;  %v700_v30 = vmul.f32 %v1469_v43, %v699_v21 }
 0x1b3   : > { %v708_v36 = vsel %vm686_vm13, 1.0, %v697_v42 }
 0x1b4   : > { %v2113_v46 = vmul.f32 %v708_v36, %v674_v20  ;;  %v2115_v0 = vmul.f32 %v708_v36, %v678_v27  ;;  %v701_v41 = vmul.f32 0.5, %v700_v30 }
 0x1b6   : > { %v702_v55 = vsub.f32 1.5, %v701_v41  ;;  %v714_v17 = vmul.f32 %v2113_v46, %v2113_v46  ;;  %v716_v35 = vmul.f32 %v2115_v0, %v2115_v0  ;;  %v726_v5 = vrot.slane %v2113_v46, 6 }
 0x1b7   : > { %v730_v11 = vrot.slane %v2115_v0, 6  ;;  %v750_v20 = vrot.slane %v2113_v46, 7  ;;  %v754_v54 = vrot.slane %v2115_v0, 7  ;;  %v774_v52 = vrot.slane %v2113_v46, 1 }
 0x1b8   : > { %v703_v8 = vmul.f32 %v1469_v43, %v702_v55  ;;  %v718_v23 = vadd.f32 %v716_v35, %v714_v17  ;;  %v778_v53 = vrot.slane %v2115_v0, 1  ;;  %v798_v49 = vrot.slane %v2113_v46, 2 }
 0x1b9   : > { %v802_v47 = vrot.slane %v2115_v0, 2 }
 0x1ba   : > { %v707_v31 = vsel %vm706_vm4, %v1469_v43, %v703_v8  ;;  %v720_v32 = vmul.f32 0.5, %v718_v23 }
 0x1bb   : > { %v709_v18 = vsel %vm687_vm5, 1.0, %v707_v31 }
 0x1bc   : > { %v2124_v27 = vmul.f32 %v709_v18, %v675_v33  ;;  %v2126_v13 = vmul.f32 %v709_v18, %v679_v29  ;;  %v722_v21 = vmul.f32 %v720_v32, %v2113_v46  ;;  %v724_v41 = vmul.f32 %v720_v32, %v2115_v0 }
 0x1be   : > { %v715_v7 = vmul.f32 %v2124_v27, %v2124_v27  ;;  %v717_v58 = vmul.f32 %v2126_v13, %v2126_v13  ;;  %v727_v25 = vrot.slane %v2124_v27, 6  ;;  %v731_v4 = vrot.slane %v2126_v13, 6 }
 0x1bf   : > { %v751_v10 = vrot.slane %v2124_v27, 7  ;;  %v755_v40 = vrot.slane %v2126_v13, 7  ;;  %v779_v16 = vrot.slane %v2126_v13, 1  ;;  %v775_v2 = vrot.slane %v2124_v27, 1 }
 0x1c0   : > { %v719_v48 = vadd.f32 %v717_v58, %v715_v7  ;;  %v728_v6 = vsel %vm302_vm8, %v726_v5, %v727_v25  ;;  %v729_v14 = vsel %vm302_vm8, %v727_v25, %v726_v5  ;;  %v732_v28 = vsel %vm302_vm8, %v730_v11, %v731_v4 }
 0x1c1   : > { %v733_v33 = vsel %vm302_vm8, %v731_v4, %v730_v11  ;;  %v734_v29 = vmul.f32 %v729_v14, %v2113_v46  ;;  %v735_v15 = vmul.f32 %v728_v6, %v2124_v27  ;;  %v737_v51 = vmul.f32 %v732_v28, %v2126_v13 }
 0x1c2   : > { %v721_v38 = vmul.f32 0.5, %v719_v48  ;;  %v736_v59 = vmul.f32 %v733_v33, %v2115_v0  ;;  %v752_v3 = vsel %vm152_vm0, %v750_v20, %v751_v10  ;;  %v753_v26 = vsel %vm152_vm0, %v751_v10, %v750_v20 }
 0x1c3   : > { %v739_v63 = vadd.f32 %v737_v51, %v735_v15  ;;  %v756_v43 = vsel %vm152_vm0, %v754_v54, %v755_v40  ;;  %v759_v36 = vmul.f32 %v752_v3, %v2124_v27  ;;  %v758_v17 = vmul.f32 %v753_v26, %v2113_v46 }
 0x1c4   : > { %v738_v42 = vadd.f32 %v736_v59, %v734_v29  ;;  %v761_v30 = vmul.f32 %v756_v43, %v2126_v13  ;;  %v781_v35 = vsel %vm167_vm2, %v779_v16, %v778_v53  ;;  %v723_v8 = vmul.f32 %v721_v38, %v2124_v27 }
 0x1c5   : > { %v741_v55 = vmul.f32 %v739_v63, %v1899_v50  ;;  %v803_v31 = vrot.slane %v2126_v13, 2  ;;  %v757_v5 = vsel %vm152_vm0, %v755_v40, %v754_v54  ;;  %v725_v18 = vmul.f32 %v721_v38, %v2126_v13 }
 0x1c6   : > { %v740_v23 = vmul.f32 %v738_v42, %v1863_v37  ;;  %v799_v11 = vrot.slane %v2124_v27, 2  ;;  %v760_v20 = vmul.f32 %v757_v5, %v2115_v0  ;;  %v776_v7 = vsel %vm167_vm2, %v774_v52, %v775_v2 }
 0x1c7   : > { %v763_v58 = vadd.f32 %v761_v30, %v759_v36  ;;  %v785_v25 = vmul.f32 %v781_v35, %v2126_v13  ;;  %v747_v10 = vmul.f32 %v741_v55, %v732_v28  ;;  %v780_v54 = vsel %vm167_vm2, %v778_v53, %v779_v16 }
 0x1c8   : > { %v742_v4 = vmul.f32 %v740_v23, %v729_v14  ;;  %v746_v32 = vmul.f32 %v740_v23, %v733_v33  ;;  %v762_v48 = vadd.f32 %v760_v20, %v758_v17  ;;  %v782_v40 = vmul.f32 %v776_v7, %v2113_v46 }
 0x1c9   : > { %v805_v29 = vsel %vm353_vm9, %v803_v31, %v802_v47  ;;  %v784_v38 = vmul.f32 %v780_v54, %v2115_v0  ;;  %v800_v14 = vsel %vm353_vm9, %v798_v49, %v799_v11  ;;  %v804_v28 = vsel %vm353_vm9, %v802_v47, %v803_v31 }
 0x1ca   : > { %v744_v15 = vadd.f32 %v742_v4, %v722_v21  ;;  %v748_v51 = vadd.f32 %v746_v32, %v724_v41  ;;  %v764_v59 = vmul.f32 %v762_v48, %v1895_v39  ;;  %v743_v53 = vmul.f32 %v741_v55, %v728_v6 }
 0x1cb   : > { %v765_v16 = vmul.f32 %v763_v58, %v1904_v60  ;;  %v786_v33 = vadd.f32 %v784_v38, %v782_v40  ;;  %v806_v63 = vmul.f32 %v800_v14, %v2113_v46  ;;  %v808_v21 = vmul.f32 %v804_v28, %v2115_v0 }
 0x1cc   : > { %v749_v42 = vadd.f32 %v747_v10, %v725_v18  ;;  %v809_v36 = vmul.f32 %v805_v29, %v2126_v13  ;;  %v766_v30 = vmul.f32 %v764_v59, %v753_v26  ;;  %v770_v41 = vmul.f32 %v764_v59, %v757_v5 }
 0x1cd   : > { %v788_v17 = vmul.f32 %v786_v33, %v1946_v62  ;;  %v810_v23 = vadd.f32 %v808_v21, %v806_v63  ;;  %v777_v6 = vsel %vm167_vm2, %v775_v2, %v774_v52  ;;  %v801_v47 = vsel %vm353_vm9, %v799_v11, %v798_v49 }
 0x1ce   : > { %v768_v55 = vadd.f32 %v766_v30, %v744_v15  ;;  %v772_v0 = vadd.f32 %v770_v41, %v748_v51  ;;  %v745_v31 = vadd.f32 %v743_v53, %v723_v8  ;;  %v783_v13 = vmul.f32 %v777_v6, %v2124_v27 }
 0x1cf   : > { %v790_v26 = vmul.f32 %v788_v17, %v776_v7  ;;  %v794_v5 = vmul.f32 %v788_v17, %v780_v54  ;;  %v812_v18 = vmul.f32 %v810_v23, %v1949_v24  ;;  %v807_v20 = vmul.f32 %v801_v47, %v2124_v27 }
 0x1d0   : > { %v771_v58 = vmul.f32 %v765_v16, %v756_v43  ;;  %v767_v4 = vmul.f32 %v765_v16, %v752_v3  ;;  %v787_v32 = vadd.f32 %v785_v25, %v783_v13 }
 0x1d1   : > { %v792_v52 = vadd.f32 %v790_v26, %v768_v55  ;;  %v796_v2 = vadd.f32 %v794_v5, %v772_v0  ;;  %v814_v46 = vmul.f32 %v812_v18, %v800_v14  ;;  %v818_v10 = vmul.f32 %v812_v18, %v804_v28 }
 0x1d2   : > { %v773_v48 = vadd.f32 %v771_v58, %v749_v42  ;;  %v769_v49 = vadd.f32 %v767_v4, %v745_v31  ;;  %v789_v11 = vmul.f32 %v787_v32, %v1919_v45  ;;  %v811_v8 = vadd.f32 %v809_v36, %v807_v20 }
 0x1d3   : > { %v816_v40 = vadd.f32 %v814_v46, %v792_v52  ;;  %v820_v15 = vadd.f32 %v818_v10, %v796_v2 }
 0x1d4   : > { %v791_v7 = vmul.f32 %v789_v11, %v777_v6  ;;  %v795_v54 = vmul.f32 %v789_v11, %v781_v35  ;;  %v813_v51 = vmul.f32 %v811_v8, %v1927_v56 }
 0x1d5   : > { %v822_v38 = vmul.f32 %v816_v40, %v816_v40  ;;  %v824_v27 = vmul.f32 %v820_v15, %v820_v15 }
 0x1d6   : > { %v793_v43 = vadd.f32 %v791_v7, %v769_v49  ;;  %v797_v3 = vadd.f32 %v795_v54, %v773_v48  ;;  %v815_v25 = vmul.f32 %v813_v51, %v801_v47  ;;  %v819_v59 = vmul.f32 %v813_v51, %v805_v29 }
 0x1d7   : > { %v826_v53 = vadd.f32 %v824_v27, %v822_v38 }
 0x1d8   : > { %v817_v14 = vadd.f32 %v815_v25, %v793_v43  ;;  %v821_v28 = vadd.f32 %v819_v59, %v797_v3 }
 0x1d9   : > { %1470 = vrsqrt.f32 %v826_v53  ;;  %vm836_vm11 = vweird.f32 %v826_v53  ;;  %vm828_vm3 = vcmp.eq.f32.partialorder %v826_v53, 0.0 }
 0x1da   : > { %v823_v16 = vmul.f32 %v817_v14, %v817_v14  ;;  %v825_v33 = vmul.f32 %v821_v28, %v821_v28 }
 0x1dc   : > { %v827_v63 = vadd.f32 %v825_v33, %v823_v16 }
 0x1de   : > { %1472 = vrsqrt.f32 %v827_v63  ;;  %vm846_vm7 = vweird.f32 %v827_v63  ;;  %vm829_vm13 = vcmp.eq.f32.partialorder %v827_v63, 0.0 }
 0x1df   : > { %v1471_v21 = vpop.eup %1470 }
 0x1e0   : > { %v831_v42 = vmul.f32 %v1471_v21, %v826_v53  ;;  %vm837_vm10 = vweird.f32 %v1471_v21 }
 0x1e1   : > { %vm838_vm1 = vmor %vm836_vm11, %vm837_vm10 }
 0x1e2   : > { %v832_v36 = vmul.f32 %v1471_v21, %v831_v42 }
 0x1e4   : > { %v1473_v35 = vpop.eup %1472  ;;  %v833_v30 = vmul.f32 0.5, %v832_v36 }
 0x1e5   : > { %v841_v41 = vmul.f32 %v1473_v35, %v827_v63  ;;  %vm847_vm6 = vweird.f32 %v1473_v35 }
 0x1e6   : > { %v834_v17 = vsub.f32 1.5, %v833_v30  ;;  %vm848_vm12 = vmor %vm846_vm7, %vm847_vm6 }
 0x1e7   : > { %v842_v23 = vmul.f32 %v1473_v35, %v841_v41 }
 0x1e8   : > { %v835_v6 = vmul.f32 %v1471_v21, %v834_v17 }
 0x1e9   : > { %v843_v29 = vmul.f32 0.5, %v842_v23 }
 0x1ea   : > { %v839_v47 = vsel %vm838_vm1, %v1471_v21, %v835_v6 }
 0x1eb   : > { %v850_v55 = vsel %vm828_vm3, 1.0, %v839_v47  ;;  %v844_v0 = vsub.f32 1.5, %v843_v29 }
 0x1ec   : > { %v2213_v31 = vmul.f32 %v850_v55, %v820_v15  ;;  %v2215_v13 = vmul.f32 %v850_v55, %v816_v40 }
 0x1ed   : > { %v845_v26 = vmul.f32 %v1473_v35, %v844_v0 }
 0x1ee   : > { %872 = vrot.lane.b32.xlu1 %v2213_v31, %s1552_s30  ;;  %868 = vrot.lane.b32.xlu2 %v2215_v13, %s1552_s30  ;;  %v856_v8 = vmul.f32 %v2215_v13, %v2215_v13  ;;  %v858_v40 = vmul.f32 %v2213_v31, %v2213_v31 }
 0x1ef   : > { %v849_v5 = vsel %vm848_vm12, %v1473_v35, %v845_v26 }
 0x1f0   : > { %v851_v18 = vsel %vm829_vm13, 1.0, %v849_v5  ;;  %v860_v59 = vadd.f32 %v858_v40, %v856_v8 }
 0x1f1   : > { %v2221_v20 = vmul.f32 %v851_v18, %v817_v14  ;;  %v2225_v58 = vmul.f32 %v851_v18, %v821_v28 }
 0x1f2   : > { %v862_v42 = vmul.f32 0.5, %v860_v59 }
 0x1f3   : > { %870 = vrot.lane.b32.xlu0 %v2221_v20, %s1552_s30  ;;  %v859_v7 = vmul.f32 %v2225_v58, %v2225_v58  ;;  %v857_v51 = vmul.f32 %v2221_v20, %v2221_v20 }
 0x1f4   : > { %v866_v26 = vmul.f32 %v862_v42, %v2213_v31  ;;  %v864_v40 = vmul.f32 %v862_v42, %v2215_v13 }
 0x1f5   : > { %v861_v28 = vadd.f32 %v859_v7, %v857_v51 }
 0x1f6   : > { %874 = vrot.lane.b32.xlu2 %v2225_v58, %s1552_s30  ;;  %894 = vrot.lane.b32.xlu1 %v2221_v20, %s1551_s28 }
 0x1f7   : > { %v863_v41 = vmul.f32 0.5, %v861_v28 }
 0x1fb   : > { %892 = vrot.lane.b32.xlu0 %v2215_v13, %s1551_s28 }
 0x1fe   : > { %896 = vrot.lane.b32.xlu2 %v2213_v31, %s1551_s28  ;;  %916 = vrot.lane.b32.xlu1 %v2215_v13, %s1550_s27 }
 0x203   : > { %898 = vrot.lane.b32.xlu0 %v2225_v58, %s1551_s28 }
 0x206   : > { %918 = vrot.lane.b32.xlu2 %v2221_v20, %s1550_s27  ;;  %922 = vrot.lane.b32.xlu1 %v2225_v58, %s1550_s27 }
 0x20b   : > { %920 = vrot.lane.b32.xlu0 %v2213_v31, %s1550_s27 }
 0x20e   : > { %940 = vrot.lane.b32.xlu2 %v2215_v13, %s1553_s3  ;;  %944 = vrot.lane.b32.xlu1 %v2213_v31, %s1553_s3 }
 0x213   : > { %942 = vrot.lane.b32.xlu0 %v2221_v20, %s1553_s3 }
 0x216   : > { %946 = vrot.lane.b32.xlu2 %v2225_v58, %s1553_s3 }
 0x248   : > { %v869_v4 = vpop.permute.xlu2 %868 }
 0x249   : > { %v876_v54 = vmul.f32 %v869_v4, %v2215_v13 }
 0x250   : > { %v875_v32 = vpop.permute.xlu2 %874 }
 0x251   : > { %v879_v3 = vmul.f32 %v875_v32, %v2225_v58 }
 0x258   : > { %v897_v2 = vpop.permute.xlu2 %896 }
 0x259   : > { %v902_v25 = vmul.f32 %v897_v2, %v2213_v31 }
 0x260   : > { %v873_v52 = vpop.permute.xlu1 %872  ;;  %v2255_v49 = vpop.permute.xlu2 %918 }
 0x261   : > { %v878_v15 = vmul.f32 %v873_v52, %v2213_v31  ;;  %v925_v29 = vmul.f32 %v2255_v49, %v2221_v20 }
 0x263   : > { %v880_v53 = vadd.f32 %v878_v15, %v876_v54 }
 0x265   : > { %v871_v46 = vpop.permute.xlu0 %870  ;;  %v882_v36 = vmul.f32 %v880_v53, %v2040_v9 }
 0x266   : > { %v877_v38 = vmul.f32 %v871_v46, %v2221_v20 }
 0x267   : > { %v884_v5 = vmul.f32 %v882_v36, %v869_v4  ;;  %v888_v18 = vmul.f32 %v882_v36, %v873_v52 }
 0x268   : > { %v2253_v10 = vpop.permute.xlu1 %894  ;;  %v881_v16 = vadd.f32 %v879_v3, %v877_v38  ;;  %v941_v33 = vpop.permute.xlu2 %940 }
 0x269   : > { %v901_v35 = vmul.f32 %v2253_v10, %v2221_v20  ;;  %v948_v8 = vmul.f32 %v941_v33, %v2215_v13  ;;  %v890_v4 = vadd.f32 %v888_v18, %v866_v26  ;;  %v886_v52 = vadd.f32 %v884_v5, %v864_v40 }
 0x26a   : > { %v883_v17 = vmul.f32 %v881_v16, %v2070_v61  ;;  %v867_v16 = vmul.f32 %v863_v41, %v2225_v58 }
 0x26c   : > { %v885_v51 = vmul.f32 %v883_v17, %v871_v46 }
 0x26d   : > { %v893_v48 = vpop.permute.xlu0 %892 }
 0x26e   : > { %v900_v27 = vmul.f32 %v893_v48, %v2215_v13 }
 0x270   : > { %v917_v11 = vpop.permute.xlu1 %916  ;;  %v904_v63 = vadd.f32 %v902_v25, %v900_v27  ;;  %v865_v25 = vmul.f32 %v863_v41, %v2221_v20  ;;  %v947_v28 = vpop.permute.xlu2 %946 }
 0x271   : > { %v924_v47 = vmul.f32 %v917_v11, %v2215_v13 }
 0x272   : > { %v906_v23 = vmul.f32 %v904_v63, %v2059_v34  ;;  %v889_v63 = vmul.f32 %v883_v17, %v875_v32 }
 0x274   : > { %v908_v38 = vmul.f32 %v906_v23, %v893_v48  ;;  %v912_v27 = vmul.f32 %v906_v23, %v897_v2  ;;  %v887_v2 = vadd.f32 %v885_v51, %v865_v25 }
 0x275   : > { %v899_v43 = vpop.permute.xlu0 %898 }
 0x276   : > { %v903_v21 = vmul.f32 %v899_v43, %v2225_v58  ;;  %v910_v42 = vadd.f32 %v908_v38, %v886_v52 }
 0x278   : > { %v923_v14 = vpop.permute.xlu1 %922  ;;  %v905_v55 = vadd.f32 %v903_v21, %v901_v35 }
 0x279   : > { %v927_v30 = vmul.f32 %v923_v14, %v2225_v58 }
 0x27a   : > { %v907_v59 = vmul.f32 %v905_v55, %v2085_v22 }
 0x27b   : > { %v929_v15 = vadd.f32 %v927_v30, %v925_v29  ;;  %v951_v30 = vmul.f32 %v947_v28, %v2225_v58 }
 0x27c   : > { %v909_v23 = vmul.f32 %v907_v59, %v2253_v10  ;;  %v913_v29 = vmul.f32 %v907_v59, %v899_v43 }
 0x27d   : > { %v921_v6 = vpop.permute.xlu0 %920  ;;  %v931_v21 = vmul.f32 %v929_v15, %v2094_v57 }
 0x27e   : > { %v926_v0 = vmul.f32 %v921_v6, %v2213_v31  ;;  %v911_v40 = vadd.f32 %v909_v23, %v887_v2 }
 0x280   : > { %v928_v7 = vadd.f32 %v926_v0, %v924_v47  ;;  %v945_v54 = vpop.permute.xlu1 %944  ;;  %v891_v0 = vadd.f32 %v889_v63, %v867_v16 }
 0x281   : > { %v950_v3 = vmul.f32 %v945_v54, %v2213_v31  ;;  %v914_v31 = vadd.f32 %v912_v27, %v890_v4 }
 0x282   : > { %v930_v53 = vmul.f32 %v928_v7, %v2074_v44 }
 0x283   : > { %v952_v13 = vadd.f32 %v950_v3, %v948_v8  ;;  %v915_v8 = vadd.f32 %v913_v29, %v891_v0 }
 0x284   : > { %v932_v46 = vmul.f32 %v930_v53, %v917_v11  ;;  %v936_v48 = vmul.f32 %v930_v53, %v921_v6  ;;  %v933_v11 = vmul.f32 %v931_v21, %v2255_v49  ;;  %v937_v6 = vmul.f32 %v931_v21, %v923_v14 }
 0x285   : > { %v954_v36 = vmul.f32 %v952_v13, %v2089_v19  ;;  %v943_v35 = vpop.permute.xlu0 %942 }
 0x286   : > { %v949_v47 = vmul.f32 %v943_v35, %v2221_v20  ;;  %v934_v41 = vadd.f32 %v932_v46, %v910_v42  ;;  %v938_v55 = vadd.f32 %v936_v48, %v914_v31  ;;  %v939_v43 = vadd.f32 %v937_v6, %v915_v8 }
 0x287   : > { %v956_v32 = vmul.f32 %v954_v36, %v941_v33  ;;  %v960_v17 = vmul.f32 %v954_v36, %v945_v54  ;;  %v935_v7 = vadd.f32 %v933_v11, %v911_v40 }
 0x288   : > { %v953_v26 = vadd.f32 %v951_v30, %v949_v47 }
 0x289   : > { %v958_v5 = vadd.f32 %v956_v32, %v934_v41  ;;  %v962_v18 = vadd.f32 %v960_v17, %v938_v55 }
 0x28a   : > { %v955_v58 = vmul.f32 %v953_v26, %v2108_v12 }
 0x28b   : > { %v964_v15 = vmul.f32 %v958_v5, %v958_v5  ;;  %v966_v10 = vmul.f32 %v962_v18, %v962_v18 }
 0x28c   : > { %v957_v20 = vmul.f32 %v955_v58, %v943_v35  ;;  %v961_v51 = vmul.f32 %v955_v58, %v947_v28 }
 0x28d   : > { %v968_v38 = vadd.f32 %v966_v10, %v964_v15 }
 0x28e   : > { %v959_v33 = vadd.f32 %v957_v20, %v935_v7  ;;  %v963_v54 = vadd.f32 %v961_v51, %v939_v43 }
 0x28f   : > { %1474 = vrsqrt.f32 %v968_v38  ;;  %vm978_vm15 = vweird.f32 %v968_v38  ;;  %vm970_vm5 = vcmp.eq.f32.partialorder %v968_v38, 0.0 }
 0x290   : > { %v965_v27 = vmul.f32 %v959_v33, %v959_v33  ;;  %v967_v49 = vmul.f32 %v963_v54, %v963_v54 }
 0x292   : > { %v969_v14 = vadd.f32 %v967_v49, %v965_v27 }
 0x294   : > { %1476 = vrsqrt.f32 %v969_v14  ;;  %vm988_vm11 = vweird.f32 %v969_v14  ;;  %vm971_vm3 = vcmp.eq.f32.partialorder %v969_v14, 0.0 }
 0x295   : > { %v1475_v3 = vpop.eup %1474 }
 0x296   : > { %v973_v25 = vmul.f32 %v1475_v3, %v968_v38  ;;  %vm979_vm14 = vweird.f32 %v1475_v3 }
 0x297   : > { %vm980_vm4 = vmor %vm978_vm15, %vm979_vm14 }
 0x298   : > { %v974_v59 = vmul.f32 %v1475_v3, %v973_v25 }
 0x29a   : > { %v1477_v53 = vpop.eup %1476  ;;  %v975_v4 = vmul.f32 0.5, %v974_v59 }
 0x29b   : > { %v983_v52 = vmul.f32 %v1477_v53, %v969_v14  ;;  %vm989_vm10 = vweird.f32 %v1477_v53 }
 0x29c   : > { %v976_v16 = vsub.f32 1.5, %v975_v4  ;;  %vm990_vm1 = vmor %vm988_vm11, %vm989_vm10 }
 0x29d   : > { %v984_v13 = vmul.f32 %v1477_v53, %v983_v52 }
 0x29e   : > { %v977_v63 = vmul.f32 %v1475_v3, %v976_v16 }
 0x29f   : > { %v985_v28 = vmul.f32 0.5, %v984_v13 }
 0x2a0   : > { %v981_v21 = vsel %vm980_vm4, %v1475_v3, %v977_v63 }
 0x2a1   : > { %v992_v46 = vsel %vm970_vm5, 1.0, %v981_v21  ;;  %v986_v48 = vsub.f32 1.5, %v985_v28 }
 0x2a2   : > { %v2297_v2 = vmul.f32 %v992_v46, %v958_v5  ;;  %v2299_v42 = vmul.f32 %v992_v46, %v962_v18 }
 0x2a3   : > { %v987_v31 = vmul.f32 %v1477_v53, %v986_v48 }
 0x2a4   : > { %v998_v36 = vmul.f32 %v2297_v2, %v2297_v2  ;;  %v1000_v35 = vmul.f32 %v2299_v42, %v2299_v42  ;;  %v1010_v47 = vrot.slane %v2297_v2, 6  ;;  %v1014_v41 = vrot.slane %v2299_v42, 6 }
 0x2a5   : > { %v991_v23 = vsel %vm990_vm1, %v1477_v53, %v987_v31  ;;  %v1034_v17 = vrot.slane %v2297_v2, 7  ;;  %v1038_v0 = vrot.slane %v2299_v42, 7  ;;  %v1058_v11 = vrot.slane %v2297_v2, 1 }
 0x2a6   : > { %v1002_v30 = vadd.f32 %v1000_v35, %v998_v36  ;;  %v993_v29 = vsel %vm971_vm3, 1.0, %v991_v23  ;;  %v1062_v6 = vrot.slane %v2299_v42, 1  ;;  %v1082_v5 = vrot.slane %v2297_v2, 2 }
 0x2a7   : > { %v2307_v55 = vmul.f32 %v993_v29, %v959_v33  ;;  %v2309_v32 = vmul.f32 %v993_v29, %v963_v54  ;;  %v1086_v43 = vrot.slane %v2299_v42, 2 }
 0x2a8   : > { %v1004_v26 = vmul.f32 0.5, %v1002_v30 }
 0x2a9   : > { %v999_v18 = vmul.f32 %v2307_v55, %v2307_v55  ;;  %v1001_v8 = vmul.f32 %v2309_v32, %v2309_v32  ;;  %v1011_v40 = vrot.slane %v2307_v55, 6  ;;  %v1015_v58 = vrot.slane %v2309_v32, 6 }
 0x2aa   : > { %v1035_v15 = vrot.slane %v2307_v55, 7  ;;  %v1039_v10 = vrot.slane %v2309_v32, 7  ;;  %v1059_v20 = vrot.slane %v2307_v55, 1  ;;  %v1063_v51 = vrot.slane %v2309_v32, 1 }
 0x2ab   : > { %v1003_v7 = vadd.f32 %v1001_v8, %v999_v18  ;;  %v1012_v38 = vsel %vm302_vm8, %v1010_v47, %v1011_v40  ;;  %v1013_v33 = vsel %vm302_vm8, %v1011_v40, %v1010_v47  ;;  %v1016_v54 = vsel %vm302_vm8, %v1014_v41, %v1015_v58 }
 0x2ac   : > { %v1036_v27 = vsel %vm152_vm0, %v1034_v17, %v1035_v15  ;;  %v1006_v49 = vmul.f32 %v1004_v26, %v2297_v2  ;;  %v1008_v14 = vmul.f32 %v1004_v26, %v2299_v42  ;;  %v1019_v3 = vmul.f32 %v1012_v38, %v2307_v55 }
 0x2ad   : > { %v1021_v25 = vmul.f32 %v1016_v54, %v2309_v32  ;;  %v1005_v59 = vmul.f32 0.5, %v1003_v7  ;;  %v1037_v53 = vsel %vm152_vm0, %v1035_v15, %v1034_v17  ;;  %v1040_v4 = vsel %vm152_vm0, %v1038_v0, %v1039_v10 }
 0x2ae   : > { %v1083_v52 = vrot.slane %v2307_v55, 2  ;;  %v1018_v16 = vmul.f32 %v1013_v33, %v2297_v2  ;;  %v1043_v63 = vmul.f32 %v1036_v27, %v2307_v55  ;;  %v1060_v28 = vsel %vm167_vm2, %v1058_v11, %v1059_v20 }
 0x2af   : > { %v1023_v13 = vadd.f32 %v1021_v25, %v1019_v3  ;;  %v1042_v21 = vmul.f32 %v1037_v53, %v2297_v2  ;;  %v1045_v46 = vmul.f32 %v1040_v4, %v2309_v32  ;;  %v1061_v48 = vsel %vm167_vm2, %v1059_v20, %v1058_v11 }
 0x2b0   : > { %v1065_v31 = vsel %vm167_vm2, %v1063_v51, %v1062_v6  ;;  %v1067_v35 = vmul.f32 %v1061_v48, %v2307_v55  ;;  %v1087_v23 = vrot.slane %v2309_v32, 2  ;;  %v1066_v29 = vmul.f32 %v1060_v28, %v2297_v2 }
 0x2b1   : > { %v1025_v36 = vmul.f32 %v1023_v13, %v1899_v50  ;;  %v1069_v30 = vmul.f32 %v1065_v31, %v2309_v32  ;;  %v1017_v47 = vsel %vm302_vm8, %v1015_v58, %v1014_v41  ;;  %v1041_v17 = vsel %vm152_vm0, %v1039_v10, %v1038_v0 }
 0x2b2   : > { %v1064_v11 = vsel %vm167_vm2, %v1062_v6, %v1063_v51  ;;  %v1007_v26 = vmul.f32 %v1005_v59, %v2307_v55  ;;  %v1009_v50 = vmul.f32 %v1005_v59, %v2309_v32  ;;  %v1047_v8 = vadd.f32 %v1045_v46, %v1043_v63 }
 0x2b3   : > { %v1027_v18 = vmul.f32 %v1025_v36, %v1012_v38  ;;  %v1031_v40 = vmul.f32 %v1025_v36, %v1016_v54  ;;  %v1020_v15 = vmul.f32 %v1017_v47, %v2299_v42  ;;  %v1044_v7 = vmul.f32 %v1041_v17, %v2299_v42 }
 0x2b4   : > { %v1068_v20 = vmul.f32 %v1064_v11, %v2299_v42  ;;  %v1071_v41 = vadd.f32 %v1069_v30, %v1067_v35  ;;  %v1089_v0 = vsel %vm353_vm9, %v1087_v23, %v1086_v43  ;;  %v1084_v6 = vsel %vm353_vm9, %v1082_v5, %v1083_v52 }
 0x2b5   : > { %v1088_v58 = vsel %vm353_vm9, %v1086_v43, %v1087_v23  ;;  %v1022_v10 = vadd.f32 %v1020_v15, %v1018_v16  ;;  %v1046_v51 = vadd.f32 %v1044_v7, %v1042_v21  ;;  %v1090_v54 = vmul.f32 %v1084_v6, %v2297_v2 }
 0x2b6   : > { %v1070_v38 = vadd.f32 %v1068_v20, %v1066_v29  ;;  %v1092_v3 = vmul.f32 %v1088_v58, %v2299_v42  ;;  %v1029_v25 = vadd.f32 %v1027_v18, %v1007_v26  ;;  %v1049_v59 = vmul.f32 %v1047_v8, %v1904_v60 }
 0x2b7   : > { %v1085_v13 = vsel %vm353_vm9, %v1083_v52, %v1082_v5  ;;  %v1033_v63 = vadd.f32 %v1031_v40, %v1009_v50  ;;  %v1093_v46 = vmul.f32 %v1089_v0, %v2309_v32  ;;  %v1024_v36 = vmul.f32 %v1022_v10, %v1863_v37 }
 0x2b8   : > { %v1048_v43 = vmul.f32 %v1046_v51, %v1895_v39  ;;  %v1094_v16 = vadd.f32 %v1092_v3, %v1090_v54  ;;  %v1051_v21 = vmul.f32 %v1049_v59, %v1036_v27  ;;  %v1073_v35 = vmul.f32 %v1071_v41, %v1919_v45 }
 0x2b9   : > { %v1091_v2 = vmul.f32 %v1085_v13, %v2307_v55  ;;  %v1026_v42 = vmul.f32 %v1024_v36, %v1013_v33  ;;  %v1030_v30 = vmul.f32 %v1024_v36, %v1017_v47  ;;  %v1072_v60 = vmul.f32 %v1070_v38, %v1946_v62 }
 0x2ba   : > { %v1055_v23 = vmul.f32 %v1049_v59, %v1040_v4  ;;  %v1050_v1 = vmul.f32 %v1048_v43, %v1037_v53  ;;  %v1054_v5 = vmul.f32 %v1048_v43, %v1041_v17  ;;  %v1053_v52 = vadd.f32 %v1051_v21, %v1029_v25 }
 0x2bb   : > { %v1028_v29 = vadd.f32 %v1026_v42, %v1006_v49  ;;  %v1032_v32 = vadd.f32 %v1030_v30, %v1008_v14  ;;  %v1096_v37 = vmul.f32 %v1094_v16, %v1949_v24  ;;  %v1075_v39 = vmul.f32 %v1073_v35, %v1061_v48 }
 0x2bc   : > { %v1057_v26 = vadd.f32 %v1055_v23, %v1033_v63  ;;  %v1079_v50 = vmul.f32 %v1073_v35, %v1065_v31  ;;  %v1095_v27 = vadd.f32 %v1093_v46, %v1091_v2  ;;  %v1074_v8 = vmul.f32 %v1072_v60, %v1060_v28 }
 0x2bd   : > { %v1052_v18 = vadd.f32 %v1050_v1, %v1028_v29  ;;  %v1056_v45 = vadd.f32 %v1054_v5, %v1032_v32  ;;  %v1078_v55 = vmul.f32 %v1072_v60, %v1064_v11  ;;  %v1077_v33 = vadd.f32 %v1075_v39, %v1053_v52 }
 0x2be   : > { %v1081_v47 = vadd.f32 %v1079_v50, %v1057_v26  ;;  %v1097_v62 = vmul.f32 %v1095_v27, %v1927_v56  ;;  %v1098_v17 = vmul.f32 %v1096_v37, %v1084_v6  ;;  %v1102_v40 = vmul.f32 %v1096_v37, %v1088_v58 }
 0x2bf   : > { %v1076_v4 = vadd.f32 %v1074_v8, %v1052_v18  ;;  %v1080_v53 = vadd.f32 %v1078_v55, %v1056_v45 }
 0x2c0   : > { %v1099_v49 = vmul.f32 %v1097_v62, %v1085_v13  ;;  %v1103_v14 = vmul.f32 %v1097_v62, %v1089_v0 }
 0x2c1   : > { %v1100_v15 = vadd.f32 %v1098_v17, %v1076_v4  ;;  %v1104_v24 = vadd.f32 %v1102_v40, %v1080_v53 }
 0x2c2   : > { %v1101_v7 = vadd.f32 %v1099_v49, %v1077_v33  ;;  %v1105_v48 = vadd.f32 %v1103_v14, %v1081_v47 }
 0x2c3   : > { %v1106_v31 = vmul.f32 %v1100_v15, %v1100_v15  ;;  %v1108_v20 = vmul.f32 %v1104_v24, %v1104_v24 }
 0x2c4   : > { %v1107_v41 = vmul.f32 %v1101_v7, %v1101_v7  ;;  %v1109_v10 = vmul.f32 %v1105_v48, %v1105_v48 }
 0x2c5   : > { %v1110_v28 = vadd.f32 %v1108_v20, %v1106_v31 }
 0x2c6   : > { %v1111_v11 = vadd.f32 %v1109_v10, %v1107_v41 }
 0x2c7   : > { %1478 = vrsqrt.f32 %v1110_v28  ;;  %vm1120_vm8 = vweird.f32 %v1110_v28  ;;  %vm1112_vm7 = vcmp.eq.f32.partialorder %v1110_v28, 0.0 }
 0x2c8   : > { %1480 = vrsqrt.f32 %v1111_v11  ;;  %vm1130_vm6 = vweird.f32 %v1111_v11  ;;  %vm1113_vm13 = vcmp.eq.f32.partialorder %v1111_v11, 0.0 }
 0x2cd   : > { %v1479_v51 = vpop.eup %1478 }
 0x2ce   : > { %v1481_v56 = vpop.eup %1480  ;;  %v1115_v38 = vmul.f32 %v1479_v51, %v1110_v28  ;;  %vm1121_vm0 = vweird.f32 %v1479_v51 }
 0x2cf   : > { %v1125_v54 = vmul.f32 %v1481_v56, %v1111_v11  ;;  %vm1131_vm2 = vweird.f32 %v1481_v56  ;;  %vm1122_vm9 = vmor %vm1120_vm8, %vm1121_vm0 }
 0x2d0   : > { %v1116_v6 = vmul.f32 %v1479_v51, %v1115_v38  ;;  %vm1132_vm12 = vmor %vm1130_vm6, %vm1131_vm2 }
 0x2d1   : > { %v1126_v58 = vmul.f32 %v1481_v56, %v1125_v54 }
 0x2d2   : > { %v1117_v3 = vmul.f32 0.5, %v1116_v6 }
 0x2d3   : > { %v1127_v0 = vmul.f32 0.5, %v1126_v58 }
 0x2d4   : > { %v1118_v25 = vsub.f32 1.5, %v1117_v3 }
 0x2d5   : > { %v1128_v59 = vsub.f32 1.5, %v1127_v0 }
 0x2d6   : > { %v1119_v13 = vmul.f32 %v1479_v51, %v1118_v25 }
 0x2d7   : > { %v1129_v63 = vmul.f32 %v1481_v56, %v1128_v59 }
 0x2d8   : > { %v1123_v46 = vsel %vm1122_vm9, %v1479_v51, %v1119_v13 }
 0x2d9   : > { %v1134_v36 = vsel %vm1112_vm7, 1.0, %v1123_v46  ;;  %v1133_v43 = vsel %vm1132_vm12, %v1481_v56, %v1129_v63 }
 0x2da   : > { %v2389_v16 = vmul.f32 %v1134_v36, %v1104_v24  ;;  %v2391_v21 = vmul.f32 %v1134_v36, %v1100_v15  ;;  %v1135_v35 = vsel %vm1113_vm13, 1.0, %v1133_v43 }
 0x2db   : > { %v2393_v2 = vmul.f32 %v1135_v35, %v1101_v7  ;;  %v2401_v42 = vmul.f32 %v1135_v35, %v1105_v48 }
 0x2dc   : > { %1156 = vrot.lane.b32.xlu2 %v2389_v16, %s1552_s30  ;;  %1152 = vrot.lane.b32.xlu0 %v2391_v21, %s1552_s30  ;;  %v1142_v50 = vmul.f32 %v2389_v16, %v2389_v16  ;;  %v1140_v27 = vmul.f32 %v2391_v21, %v2391_v21 }
 0x2dd   : > { %1154 = vrot.lane.b32.xlu1 %v2393_v2, %s1552_s30  ;;  %v1141_v14 = vmul.f32 %v2393_v2, %v2393_v2  ;;  %v1143_v15 = vmul.f32 %v2401_v42, %v2401_v42 }
 0x2de   : > { %v1144_v33 = vadd.f32 %v1142_v50, %v1140_v27 }
 0x2df   : > { %v1145_v56 = vadd.f32 %v1143_v15, %v1141_v14 }
 0x2e0   : > { %v1146_v24 = vmul.f32 0.5, %v1144_v33 }
 0x2e2   : > { %v1148_v54 = vmul.f32 %v1146_v24, %v2391_v21  ;;  %v1150_v58 = vmul.f32 %v1146_v24, %v2389_v16 }
 0x2e4   : > { %1158 = vrot.lane.b32.xlu0 %v2401_v42, %s1552_s30  ;;  %1178 = vrot.lane.b32.xlu2 %v2393_v2, %s1551_s28 }
 0x2e5   : > { %1176 = vrot.lane.b32.xlu1 %v2391_v21, %s1551_s28 }
 0x2ec   : > { %1180 = vrot.lane.b32.xlu0 %v2389_v16, %s1551_s28  ;;  %1200 = vrot.lane.b32.xlu2 %v2391_v21, %s1550_s27 }
 0x2ed   : > { %1182 = vrot.lane.b32.xlu1 %v2401_v42, %s1551_s28 }
 0x2f4   : > { %1202 = vrot.lane.b32.xlu0 %v2393_v2, %s1550_s27  ;;  %1206 = vrot.lane.b32.xlu2 %v2401_v42, %s1550_s27 }
 0x2f5   : > { %1204 = vrot.lane.b32.xlu1 %v2389_v16, %s1550_s27 }
 0x2fc   : > { %1224 = vrot.lane.b32.xlu0 %v2391_v21, %s1553_s3  ;;  %1228 = vrot.lane.b32.xlu2 %v2389_v16, %s1553_s3 }
 0x2fd   : > { %1226 = vrot.lane.b32.xlu1 %v2393_v2, %s1553_s3 }
 0x304   : > { %1230 = vrot.lane.b32.xlu0 %v2401_v42, %s1553_s3 }
 0x336   : > { %v1157_v30 = vpop.permute.xlu2 %1156 }
 0x337   : > { %v1162_v39 = vmul.f32 %v1157_v30, %v2389_v16 }
 0x33e   : > { %v2429_v60 = vpop.permute.xlu2 %1178 }
 0x33f   : > { %v1185_v20 = vmul.f32 %v2429_v60, %v2393_v2 }
 0x346   : > { %v1201_v29 = vpop.permute.xlu2 %1200 }
 0x347   : > { %v1208_v53 = vmul.f32 %v1201_v29, %v2391_v21 }
 0x34e   : > { %v1153_v23 = vpop.permute.xlu0 %1152  ;;  %v2441_v18 = vpop.permute.xlu2 %1206 }
 0x34f   : > { %v1155_v1 = vpop.permute.xlu1 %1154  ;;  %v1160_v26 = vmul.f32 %v1153_v23, %v2391_v21  ;;  %v1211_v6 = vmul.f32 %v2441_v18, %v2401_v42 }
 0x350   : > { %v1161_v7 = vmul.f32 %v1155_v1, %v2393_v2 }
 0x351   : > { %v1164_v8 = vadd.f32 %v1162_v39, %v1160_v26 }
 0x353   : > { %v1166_v17 = vmul.f32 %v1164_v8, %v2040_v9 }
 0x355   : > { %v1168_v41 = vmul.f32 %v1166_v17, %v1153_v23  ;;  %v1172_v51 = vmul.f32 %v1166_v17, %v1157_v30  ;;  %v1147_v23 = vmul.f32 0.5, %v1145_v56 }
 0x356   : > { %v2431_v5 = vpop.permute.xlu0 %1158  ;;  %v1229_v28 = vpop.permute.xlu2 %1228 }
 0x357   : > { %v1177_v52 = vpop.permute.xlu1 %1176  ;;  %v1163_v40 = vmul.f32 %v2431_v5, %v2401_v42  ;;  %v1234_v0 = vmul.f32 %v1229_v28, %v2389_v16  ;;  %v1170_v63 = vadd.f32 %v1168_v41, %v1148_v54  ;;  %v1149_v33 = vmul.f32 %v1147_v23, %v2393_v2 }
 0x358   : > { %v1184_v55 = vmul.f32 %v1177_v52, %v2391_v21 }
 0x359   : > { %v1165_v10 = vadd.f32 %v1163_v40, %v1161_v7 }
 0x35b   : > { %v1167_v46 = vmul.f32 %v1165_v10, %v2070_v61 }
 0x35e   : > { %v1181_v32 = vpop.permute.xlu0 %1180 }
 0x35f   : > { %v2433_v37 = vpop.permute.xlu1 %1182  ;;  %v1186_v45 = vmul.f32 %v1181_v32, %v2389_v16 }
 0x360   : > { %v1187_v48 = vmul.f32 %v2433_v37, %v2401_v42 }
 0x361   : > { %v1188_v62 = vadd.f32 %v1186_v45, %v1184_v55  ;;  %v1173_v55 = vmul.f32 %v1167_v46, %v2431_v5 }
 0x363   : > { %v1190_v9 = vmul.f32 %v1188_v62, %v2059_v34  ;;  %v1189_v34 = vadd.f32 %v1187_v48, %v1185_v20 }
 0x365   : > { %v1192_v25 = vmul.f32 %v1190_v9, %v1177_v52  ;;  %v1196_v59 = vmul.f32 %v1190_v9, %v1181_v32  ;;  %v1191_v26 = vmul.f32 %v1189_v34, %v2085_v22 }
 0x366   : > { %v1203_v47 = vpop.permute.xlu0 %1202 }
 0x367   : > { %v1205_v4 = vpop.permute.xlu1 %1204  ;;  %v1209_v11 = vmul.f32 %v1203_v47, %v2393_v2  ;;  %v1194_v50 = vadd.f32 %v1192_v25, %v1170_v63 }
 0x368   : > { %v1210_v49 = vmul.f32 %v1205_v4, %v2389_v16  ;;  %v1169_v16 = vmul.f32 %v1167_v46, %v1155_v1  ;;  %v1197_v1 = vmul.f32 %v1191_v26, %v2433_v37 }
 0x369   : > { %v1213_v36 = vadd.f32 %v1211_v6, %v1209_v11 }
 0x36a   : > { %v1212_v31 = vadd.f32 %v1210_v49, %v1208_v53  ;;  %v1171_v17 = vadd.f32 %v1169_v16, %v1149_v33 }
 0x36b   : > { %v1215_v52 = vmul.f32 %v1213_v36, %v2094_v57  ;;  %v1151_v57 = vmul.f32 %v1147_v23, %v2401_v42 }
 0x36c   : > { %v1214_v38 = vmul.f32 %v1212_v31, %v2074_v44  ;;  %v1174_v44 = vadd.f32 %v1172_v51, %v1150_v58 }
 0x36d   : > { %v1217_v40 = vmul.f32 %v1215_v52, %v1203_v47  ;;  %v1175_v15 = vadd.f32 %v1173_v55, %v1151_v57 }
 0x36e   : > { %v1225_v3 = vpop.permute.xlu0 %1224  ;;  %v1216_v43 = vmul.f32 %v1214_v38, %v1201_v29  ;;  %v1220_v35 = vmul.f32 %v1214_v38, %v1205_v4  ;;  %v1198_v39 = vadd.f32 %v1196_v59, %v1174_v44  ;;  %v1193_v29 = vmul.f32 %v1191_v26, %v2429_v60 }
 0x36f   : > { %v1232_v13 = vmul.f32 %v1225_v3, %v2391_v21  ;;  %v1227_v32 = vpop.permute.xlu1 %1226  ;;  %v1221_v60 = vmul.f32 %v1215_v52, %v2441_v18  ;;  %v1199_v31 = vadd.f32 %v1197_v1, %v1175_v15 }
 0x370   : > { %v1222_v21 = vadd.f32 %v1220_v35, %v1198_v39  ;;  %v1218_v45 = vadd.f32 %v1216_v43, %v1194_v50  ;;  %v1233_v53 = vmul.f32 %v1227_v32, %v2393_v2  ;;  %v1195_v24 = vadd.f32 %v1193_v29, %v1171_v17 }
 0x371   : > { %v1236_v30 = vadd.f32 %v1234_v0, %v1232_v13 }
 0x372   : > { %v1219_v2 = vadd.f32 %v1217_v40, %v1195_v24 }
 0x373   : > { %v1238_v27 = vmul.f32 %v1236_v30, %v2089_v19 }
 0x375   : > { %v1240_v8 = vmul.f32 %v1238_v27, %v1225_v3  ;;  %v1244_v61 = vmul.f32 %v1238_v27, %v1229_v28 }
 0x376   : > { %v1231_v62 = vpop.permute.xlu0 %1230 }
 0x377   : > { %v1242_v22 = vadd.f32 %v1240_v8, %v1218_v45  ;;  %v1246_v4 = vadd.f32 %v1244_v61, %v1222_v21  ;;  %v1235_v19 = vmul.f32 %v1231_v62, %v2401_v42  ;;  %v1223_v42 = vadd.f32 %v1221_v60, %v1199_v31 }
 0x379   : > { %v1248_v49 = vmul.f32 %v1242_v22, %v1242_v22  ;;  %v1250_v14 = vmul.f32 %v1246_v4, %v1246_v4  ;;  %v1237_v5 = vadd.f32 %v1235_v19, %v1233_v53 }
 0x37b   : > { %v1252_v7 = vadd.f32 %v1250_v14, %v1248_v49  ;;  %v1239_v48 = vmul.f32 %v1237_v5, %v2108_v12 }
 0x37d   : > { %1482 = vrsqrt.f32 %v1252_v7  ;;  %v1241_v9 = vmul.f32 %v1239_v48, %v1227_v32  ;;  %v1245_v37 = vmul.f32 %v1239_v48, %v1231_v62  ;;  %vm1262_vm15 = vweird.f32 %v1252_v7 }
 0x37e   : > { %vm1254_vm5 = vcmp.eq.f32.partialorder %v1252_v7, 0.0 }
 0x37f   : > { %v1243_v20 = vadd.f32 %v1241_v9, %v1219_v2  ;;  %v1247_v47 = vadd.f32 %v1245_v37, %v1223_v42 }
 0x381   : > { %v1249_v41 = vmul.f32 %v1243_v20, %v1243_v20  ;;  %v1251_v10 = vmul.f32 %v1247_v47, %v1247_v47 }
 0x383   : > { %v1483_v28 = vpop.eup %1482  ;;  %v1253_v51 = vadd.f32 %v1251_v10, %v1249_v41 }
 0x384   : > { %v1257_v11 = vmul.f32 %v1483_v28, %v1252_v7  ;;  %vm1263_vm14 = vweird.f32 %v1483_v28 }
 0x385   : > { %1484 = vrsqrt.f32 %v1253_v51  ;;  %vm1264_vm4 = vmor %vm1262_vm15, %vm1263_vm14  ;;  %vm1272_vm11 = vweird.f32 %v1253_v51  ;;  %vm1255_vm3 = vcmp.eq.f32.partialorder %v1253_v51, 0.0 }
 0x386   : > { %v1258_v18 = vmul.f32 %v1483_v28, %v1257_v11 }
 0x388   : > { %v1259_v56 = vmul.f32 0.5, %v1258_v18 }
 0x38a   : > { %v1260_v12 = vsub.f32 1.5, %v1259_v56 }
 0x38b   : > { %v1485_v38 = vpop.eup %1484 }
 0x38c   : > { %v1261_v54 = vmul.f32 %v1483_v28, %v1260_v12  ;;  %v1267_v6 = vmul.f32 %v1485_v38, %v1253_v51  ;;  %vm1273_vm10 = vweird.f32 %v1485_v38 }
 0x38d   : > { %vm1274_vm1 = vmor %vm1272_vm11, %vm1273_vm10 }
 0x38e   : > { %v1265_v58 = vsel %vm1264_vm4, %v1483_v28, %v1261_v54  ;;  %v1268_v3 = vmul.f32 %v1485_v38, %v1267_v6 }
 0x38f   : > { %v1276_v34 = vsel %vm1254_vm5, 1.0, %v1265_v58 }
 0x390   : > { %v1278_v0 = vmul.f32 %v1276_v34, %v1242_v22  ;;  %v1280_v25 = vmul.f32 %v1276_v34, %v1246_v4  ;;  %v1269_v59 = vmul.f32 0.5, %v1268_v3 }
 0x392   : > { %1282 = vst [vmem:[%s137_s7] sm:$0xff] %v1278_v0  ;;  %v1270_v13 = vsub.f32 1.5, %v1269_v59 }
 0x393   : > { %1372 = vst [vmem:[%s137_s7 + $0x10] sm:$0xff] %v1280_v25 }
 0x394   : > { %v1271_v63 = vmul.f32 %v1485_v38, %v1270_v13 }
 0x396   : > { %v1275_v46 = vsel %vm1274_vm1, %v1485_v38, %v1271_v63 }
 0x397   : > { %v1277_v36 = vsel %vm1255_vm3, 1.0, %v1275_v46 }
 0x398   : > { %v1279_v44 = vmul.f32 %v1277_v36, %v1243_v20  ;;  %v1281_v43 = vmul.f32 %v1277_v36, %v1247_v47 }
 0x39a   : > { %1283 = vst [vmem:[%s137_s7 + $0x8] sm:$0xff] %v1279_v44 }
 0x39b   : > { %1373 = vst [vmem:[%s137_s7 + $0x18] sm:$0xff] %v1281_v43 }
 0x39c   : > { %1513 = shalt.err (!%p1510_p3)
}
 0x39d   : > { %s1554_s28 = smov 128   ;;  %s1555_s29 = smov 8  }
 0x39e   : > { %1381 = dma.vmem_to_hbm [thread:$0]  (%p1612_p5), %s1301_s15, 512, %s1303_s17, %s1288_s0, %s1554_s28, %s1554_s28, %s1555_s29  }
 0x39f PF: > { %p1387_p4 = scmp.ge.s32.totalorder %s1548_s14, 2  ;;  %s1317_s30 = sand.u32 1, %s1536_s11  }
 0x3a0   : > { %s1318_s3 = scalar_lea.sflag [#allocation4], %s1317_s30 }
 0x3a1   : > { %p1384_p7 = pnand %p1387_p4, %p1616_p6 }
 0x3a3   : > { %p1385_p8 = pneg %p1384_p7 }
 0x3a5   : > { %1531 = dma.done.wait (%p1385_p8), %s1318_s3, 512  }
 0x3a6   : > { %1533 = vsyncadd (%p1385_p8), %s1318_s3, 4294966784  ;;  %p13_p9 = scmp.ge.s32.totalorder %s1599_s16, 4   ;;  %s2526_s11 = smov %s1540_s12 }
 0x3a7   : > { %s2527_s12 = smov %s1544_s13  ;;  %s2528_s13 = smov %s1610_s19 }
 0x3a8   : > { %s2529_s14 = smov %s1599_s16  ;;  %15 = sbr.rel (!%p13_p9) target bundleno = 5 (0x5), region = 64 }
 0x3ad   :  { %1324 = vsyncpa [#allocation4], 1 }
 0x3ae   :  { %1326 = vsyncpa [#allocation4 + $0x1], 1 }

</bundles_post_ra>
